<compile_context>
chip_gen: v6e
topology: v6e:2x2x1
jax: 0.10.0
libtpu: 0.0.40
codegen_flags: <defaults>
</compile_context>

<pallas_src>
import functools

import jax
import jax.numpy as jnp
from jax.experimental import pallas as pl
from jax.experimental.pallas import tpu as pltpu

_LANE = 128
_VMEM_LIMIT = 48 * 1024 * 1024  # fits v7x's 64 MiB VMEM with headroom


def _round_up(x, m):
    return (x + m - 1) // m * m


# ----------------------------- Pallas kernels -----------------------------

def _mm_bias_kernel(x_ref, w_ref, b_ref, o_ref, acc_ref, *, relu):
    """K-tiled GEMM: o = relu_opt(x @ w + b).  Grid = (M tiles, K tiles)."""
    k = pl.program_id(1)

    @pl.when(k == 0)
    def _init():
        acc_ref[...] = jnp.zeros_like(acc_ref)

    acc_ref[...] += jnp.dot(x_ref[...], w_ref[...],
                            preferred_element_type=jnp.float32)

    @pl.when(k == pl.num_programs(1) - 1)
    def _finalize():
        y = acc_ref[...] + b_ref[...]
        if relu:
            y = jnp.maximum(y, 0.0)
        o_ref[...] = y.astype(o_ref.dtype)


def _conv3x3_kernel(*refs, wp, m_rows, relu, has_residual):
    """Direct 3x3 stride-1 conv on a flattened, spatially padded image.

    x_ref : (1, Lx, Cin_p)        bf16  flattened padded image (one sample)
    w_ref : (9, Cin_p, Cout_p)    bf16  per-tap weight matrices (BN scale folded)
    b_ref : (1, Cout_p)           f32   folded BN shift
    r_ref : (1, m_rows, Cout_p)   bf16  optional residual (padded-width layout)
    o_ref : (1, m_rows, Cout_p)         output, rows = Ho * Wp (garbage cols
                                        at w >= Wo are sliced off by the wrapper)
    acc   : VMEM (m_rows, Cout_p) f32
    """
    if has_residual:
        x_ref, w_ref, b_ref, r_ref, o_ref, acc_ref = refs
    else:
        x_ref, w_ref, b_ref, o_ref, acc_ref = refs
        r_ref = None

    first = True
    for kh in range(3):
        for kw in range(3):
            off = kh * wp + kw                      # static sublane offset
            lhs = x_ref[0, pl.ds(off, m_rows), :]   # (m_rows, Cin_p)
            contrib = jnp.dot(lhs, w_ref[kh * 3 + kw],
                              preferred_element_type=jnp.float32)
            if first:
                acc_ref[...] = contrib
                first = False
            else:
                acc_ref[...] += contrib

    y = acc_ref[...] + b_ref[...]
    if r_ref is not None:
        y = y + r_ref[0].astype(jnp.float32)
    if relu:
        y = jnp.maximum(y, 0.0)
    o_ref[0] = y.astype(o_ref.dtype)


# ----------------------------- Pallas wrappers -----------------------------

def matmul_bias(x, w, bias, *, relu, out_dtype=jnp.bfloat16):
    """relu_opt(x @ w + bias) with lane-dense padding and a K grid axis.

    x: (M, K) f32/bf16, w: (K, Cout), bias: (Cout,).
    Returns the padded (Mp, Cout_p) result; caller slices rows / channels.
    """
    M, K = x.shape
    K2, Cout = w.shape
    assert K == K2
    Kp = _round_up(K, _LANE)
    Cp = _round_up(Cout, _LANE)
    tm = 512 if M >= 512 else _round_up(M, 8)
    Mp = _round_up(M, tm)
    tk = next(t for t in (512, 384, 256, 128) if Kp % t == 0)

    xp = jnp.zeros((Mp, Kp), jnp.bfloat16).at[:M, :K].set(x.astype(jnp.bfloat16))
    wp = jnp.zeros((Kp, Cp), jnp.bfloat16).at[:K, :Cout].set(w.astype(jnp.bfloat16))
    bp = jnp.zeros((1, Cp), jnp.float32).at[0, :Cout].set(bias.astype(jnp.float32))

    return pl.pallas_call(
        functools.partial(_mm_bias_kernel, relu=relu),
        out_shape=jax.ShapeDtypeStruct((Mp, Cp), out_dtype),
        grid=(Mp // tm, Kp // tk),
        in_specs=[
            pl.BlockSpec((tm, tk), lambda i, k: (i, k)),   # activations
            pl.BlockSpec((tk, Cp), lambda i, k: (k, 0)),   # weights (scale folded)
            pl.BlockSpec((1, Cp), lambda i, k: (0, 0)),    # bias
        ],
        out_specs=pl.BlockSpec((tm, Cp), lambda i, k: (i, 0)),
        scratch_shapes=[pltpu.VMEM((tm, Cp), jnp.float32)],
        compiler_params=pltpu.CompilerParams(
            dimension_semantics=("parallel", "arbitrary"),
            vmem_limit_bytes=_VMEM_LIMIT),
    )(xp, wp, bp)


def conv3x3_s1_bn(x_nhwc, w_oihw, scale, shift, residual=None, relu=True,
                  out_dtype=jnp.bfloat16):
    """3x3 conv (stride 1, pad 1) + folded BN (+ residual) (+ ReLU), direct in-kernel.

    x_nhwc may carry extra zero-padded channels (Cx >= Cin of the weights).
    Returns (N, H, W, Cout_p) with zero-padded output channels.
    """
    N, H, W, Cx = x_nhwc.shape
    Cout, Cin, KH, KW = w_oihw.shape
    assert (KH, KW) == (3, 3) and Cx >= Cin
    Ho, Wo = H, W
    Hp, Wp = H + 2, W + 2
    Cin_p = _round_up(Cx, _LANE)
    Cout_p = _round_up(Cout, _LANE)
    m_rows = Ho * Wp
    lx = (Hp + 1) * Wp          # one extra zero row keeps every tap window in-bounds

    # padded + flattened input image, bf16, lane-dense channels
    xp = jnp.zeros((N, Hp + 1, Wp, Cin_p), jnp.bfloat16)
    xp = xp.at[:, 1:H + 1, 1:W + 1, :Cx].set(x_nhwc.astype(jnp.bfloat16))
    xp = xp.reshape(N, lx, Cin_p)

    # per-tap weight matrices with BN scale folded in: (9, Cin_p, Cout_p)
    wf = (w_oihw.astype(jnp.float32) * scale[:, None, None, None])
    wf = jnp.transpose(wf, (2, 3, 1, 0)).reshape(9, Cin, Cout)
    w_taps = jnp.zeros((9, Cin_p, Cout_p), jnp.bfloat16)
    w_taps = w_taps.at[:, :Cin, :Cout].set(wf.astype(jnp.bfloat16))

    bp = jnp.zeros((1, Cout_p), jnp.float32).at[0, :Cout].set(
        shift.astype(jnp.float32))

    args = [xp, w_taps, bp]
    in_specs = [
        pl.BlockSpec((1, lx, Cin_p), lambda n: (n, 0, 0)),
        pl.BlockSpec((9, Cin_p, Cout_p), lambda n: (0, 0, 0)),
        pl.BlockSpec((1, Cout_p), lambda n: (0, 0)),
    ]
    has_res = residual is not None
    if has_res:
        Cr = residual.shape[-1]
        rp = jnp.zeros((N, Ho, Wp, Cout_p), jnp.bfloat16)
        rp = rp.at[:, :, :Wo, :Cr].set(residual.astype(jnp.bfloat16))
        rp = rp.reshape(N, m_rows, Cout_p)
        args.append(rp)
        in_specs.append(pl.BlockSpec((1, m_rows, Cout_p), lambda n: (n, 0, 0)))

    out = pl.pallas_call(
        functools.partial(_conv3x3_kernel, wp=Wp, m_rows=m_rows, relu=relu,
                          has_residual=has_res),
        out_shape=jax.ShapeDtypeStruct((N, m_rows, Cout_p), out_dtype),
        grid=(N,),
        in_specs=in_specs,
        out_specs=pl.BlockSpec((1, m_rows, Cout_p), lambda n: (n, 0, 0)),
        scratch_shapes=[pltpu.VMEM((m_rows, Cout_p), jnp.float32)],
        compiler_params=pltpu.CompilerParams(
            dimension_semantics=("parallel",),
            vmem_limit_bytes=_VMEM_LIMIT),
    )(*args)

    # drop the garbage width columns (w >= Wo); keep channel padding
    return out.reshape(N, Ho, Wp, Cout_p)[:, :, :Wo, :]


# ------------------------------ JAX glue ----------------------------------

def im2col(x_nhwc, k, stride, padding):
    """Extract k x k patches; column order is (kh, kw, cin)."""
    N, H, W, C = x_nhwc.shape
    xp = jnp.pad(x_nhwc, ((0, 0), (padding, padding), (padding, padding), (0, 0)))
    Ho = (H + 2 * padding - k) // stride + 1
    Wo = (W + 2 * padding - k) // stride + 1
    cols = []
    for di in range(k):
        for dj in range(k):
            cols.append(xp[:, di:di + stride * Ho:stride,
                           dj:dj + stride * Wo:stride, :])
    patches = jnp.concatenate(cols, axis=-1)
    return patches.reshape(N * Ho * Wo, k * k * C), (N, Ho, Wo)


def fold_bn(gamma, beta, mean, var, eps=1e-5):
    scale = gamma / jnp.sqrt(var + eps)
    return scale, beta - mean * scale


def conv_w_to_matrix(w_oihw):
    # (O, I, KH, KW) -> (KH*KW*I, O), matching im2col column order (kh, kw, cin)
    O, I, KH, KW = w_oihw.shape
    return jnp.transpose(w_oihw, (2, 3, 1, 0)).reshape(KH * KW * I, O)


def init_basic_block(key, in_planes, planes, stride):
    ks = jax.random.split(key, 6)

    def conv_w(k, cout, cin, kh, kw):
        fan_in = cin * kh * kw
        return jax.random.normal(k, (cout, cin, kh, kw), jnp.float32) / jnp.sqrt(
            jnp.asarray(fan_in, jnp.float32))

    def bn_params(k, c):
        k1, k2, k3, k4 = jax.random.split(k, 4)
        gamma = 1.0 + 0.1 * jax.random.normal(k1, (c,), jnp.float32)
        beta = 0.1 * jax.random.normal(k2, (c,), jnp.float32)
        mean = 0.1 * jax.random.normal(k3, (c,), jnp.float32)
        var = jnp.abs(jax.random.normal(k4, (c,), jnp.float32)) + 0.5
        return (gamma, beta, mean, var)

    params = {
        "conv1_w": conv_w(ks[0], planes, in_planes, 3, 3),
        "bn1": bn_params(ks[1], planes),
        "conv2_w": conv_w(ks[2], planes, planes, 3, 3),
        "bn2": bn_params(ks[3], planes),
    }
    if stride != 1 or in_planes != planes:
        params["sc_w"] = conv_w(ks[4], planes, in_planes, 1, 1)
        params["bn_sc"] = bn_params(ks[5], planes)
    return params


def basic_block_forward(x_nchw, params, stride):
    """out = relu(bn2(conv2(relu(bn1(conv1(x))))) + shortcut(x))"""
    x = jnp.transpose(x_nchw, (0, 2, 3, 1))  # NCHW -> NHWC
    N, H, W, Cin = x.shape
    planes = params["conv1_w"].shape[0]
    Ho = (H + 2 - 3) // stride + 1
    Wo = (W + 2 - 3) // stride + 1
    M = N * Ho * Wo

    # ---- conv1 (3x3, stride, pad 1) + bn1 + relu ----
    s1, b1 = fold_bn(*params["bn1"])
    if stride == 1:
        o1 = conv3x3_s1_bn(x, params["conv1_w"], s1, b1, relu=True,
                           out_dtype=jnp.bfloat16)            # (N,Ho,Wo,Cp)
    else:
        patches, _ = im2col(x, 3, stride, 1)
        w1 = conv_w_to_matrix(params["conv1_w"]) * s1[None, :]  # fold BN scale
        o1_flat = matmul_bias(patches, w1, b1, relu=True,
                              out_dtype=jnp.bfloat16)
        o1 = o1_flat[:M].reshape(N, Ho, Wo, -1)                # (N,Ho,Wo,Cp)

    # ---- shortcut: identity, or conv1x1(stride) + bn ----
    if "sc_w" in params:
        ssc, bsc = fold_bn(*params["bn_sc"])
        xs = x[:, ::stride, ::stride, :][:, :Ho, :Wo, :].reshape(M, Cin)
        wsc = conv_w_to_matrix(params["sc_w"]) * ssc[None, :]
        sc_flat = matmul_bias(xs, wsc, bsc, relu=False, out_dtype=jnp.bfloat16)
        sc = sc_flat[:M].reshape(N, Ho, Wo, -1)
    else:
        sc = x  # stride == 1 and Cin == planes guaranteed here

    # ---- conv2 (3x3, stride 1, pad 1) + bn2 + residual + relu ----
    s2, b2 = fold_bn(*params["bn2"])
    out = conv3x3_s1_bn(o1, params["conv2_w"], s2, b2, residual=sc, relu=True,
                        out_dtype=jnp.float32)                 # (N,Ho,Wo,Cout_p)
    out = out[..., :planes]
    return jnp.transpose(out, (0, 3, 1, 2))  # NHWC -> NCHW


# --------------------------- pure-JAX reference ----------------------------

def reference_forward(x, params, stride):
    dn = ("NCHW", "OIHW", "NCHW")

    def conv(x, w, s, pad):
        return jax.lax.conv_general_dilated(
            x, w, (s, s), ((pad, pad), (pad, pad)),
            dimension_numbers=dn, precision=jax.lax.Precision.HIGHEST)

    def bn(y, p):
        gamma, beta, mean, var = p
        scale = gamma / jnp.sqrt(var + 1e-5)
        shift = beta - mean * scale
        return y * scale[None, :, None, None] + shift[None, :, None, None]

    o = jax.nn.relu(bn(conv(x, params["conv1_w"], stride, 1), params["bn1"]))
    o = bn(conv(o, params["conv2_w"], 1, 1), params["bn2"])
    if "sc_w" in params:
        sc = bn(conv(x, params["sc_w"], stride, 0), params["bn_sc"])
    else:
        sc = x
    return jax.nn.relu(o + sc)


# --------------------------------- main ------------------------------------

if __name__ == "__main__":
    key = jax.random.PRNGKey(0)
    kx, kp, kp2 = jax.random.split(key, 3)

    # Config 1: downsampling block (projection shortcut): stride 2, Cin != planes.
    N, Cin, H, W = 2, 4, 16, 16
    planes, stride = 8, 2
    x = jax.random.normal(kx, (N, Cin, H, W), jnp.float32)
    params = init_basic_block(kp, Cin, planes, stride)

    fwd = jax.jit(functools.partial(basic_block_forward, params=params,
                                    stride=stride))
    out = jax.block_until_ready(fwd(x))
    ref = jax.block_until_ready(reference_forward(x, params, stride))
    assert out.shape == ref.shape == (N, planes, H // stride, W // stride)
    # bf16 operands (f32 accumulation) vs f32 HIGHEST reference -> ~1% tolerance.
    assert jnp.allclose(out, ref, atol=3e-2, rtol=3e-2)

    # Config 2: identity-shortcut block: stride 1, Cin == planes.
    x2 = jax.random.normal(kx, (N, planes, H, W), jnp.float32)
    params2 = init_basic_block(kp2, planes, planes, 1)
    fwd2 = jax.jit(functools.partial(basic_block_forward, params=params2,
                                     stride=1))
    out2 = jax.block_until_ready(fwd2(x2))
    ref2 = jax.block_until_ready(reference_forward(x2, params2, 1))
    assert out2.shape == ref2.shape == (N, planes, H, W)
    assert jnp.allclose(out2, ref2, atol=3e-2, rtol=3e-2)

    print("KERNEL_OK")
</pallas_src>

<mosaic_0001>
module attributes {stable_mosaic.version = 11 : i64} {
  func.func @_mm_bias_kernel(%arg0: i32, %arg1: i32, %arg2: memref<128x128xbf16, #tpu.memory_space<vmem>>, %arg3: memref<128x128xbf16, #tpu.memory_space<vmem>>, %arg4: memref<1x128xf32, #tpu.memory_space<vmem>>, %arg5: memref<128x128xbf16, #tpu.memory_space<vmem>>, %arg6: memref<128x128xf32, #tpu.memory_space<vmem>>) attributes {dimension_semantics = [#tpu.dimension_semantics<parallel>, #tpu.dimension_semantics<arbitrary>], iteration_bounds = array<i64: 1, 1>, scalar_prefetch = 0 : i64, scratch_operands = 1 : i64, tpu.core_type = #tpu.core_type<tc>, window_params = [{transform_indices = @transform_0, window_bounds = array<i64: 128, 128>}, {transform_indices = @transform_1, window_bounds = array<i64: 128, 128>}, {pipeline_mode = #tpu.pipeline_mode<synchronous>, transform_indices = @transform_2, window_bounds = array<i64: 1, 128>}, {transform_indices = @transform_3, window_bounds = array<i64: 128, 128>}]} {
    %c0_i32 = arith.constant 0 : i32
    %0 = arith.cmpi eq, %arg1, %c0_i32 : i32
    %1 = arith.extui %0 : i1 to i32
    %c0_i32_0 = arith.constant 0 : i32
    %2 = arith.cmpi ne, %1, %c0_i32_0 : i32
    scf.if %2 {
      %cst_10 = arith.constant 0.000000e+00 : f32
      %12 = vector.broadcast %cst_10 : f32 to vector<128x128xf32>
      %c0_11 = arith.constant 0 : index
      %c0_12 = arith.constant 0 : index
      %13 = vector.load %arg6[%c0_11, %c0_12] : memref<128x128xf32, #tpu.memory_space<vmem>>, vector<128x128xf32>
      tpu.vector_store %arg6[%c0_11, %c0_12], %12 {strides = array<i32>} : memref<128x128xf32, #tpu.memory_space<vmem>>, vector<128x128xf32>,
    } else {
    }
    %c0 = arith.constant 0 : index
    %c0_1 = arith.constant 0 : index
    %3 = vector.load %arg6[%c0, %c0_1] : memref<128x128xf32, #tpu.memory_space<vmem>>, vector<128x128xf32>
    %c0_2 = arith.constant 0 : index
    %c0_3 = arith.constant 0 : index
    %4 = vector.load %arg2[%c0_2, %c0_3] : memref<128x128xbf16, #tpu.memory_space<vmem>>, vector<128x128xbf16>
    %c0_4 = arith.constant 0 : index
    %c0_5 = arith.constant 0 : index
    %5 = vector.load %arg3[%c0_4, %c0_5] : memref<128x128xbf16, #tpu.memory_space<vmem>>, vector<128x128xbf16>
    %cst = arith.constant dense<0.000000e+00> : vector<128x128xf32>
    %6 = tpu.matmul %4, %5, %cst {dimension_numbers = #tpu.dot_dimension_numbers<[1], [0], [0], [1], [0, 0, 1, 1], [], []>} : vector<128x128xbf16>, vector<128x128xbf16>, vector<128x128xf32> -> vector<128x128xf32>
    %7 = arith.addf %3, %6 : vector<128x128xf32>
    %c0_6 = arith.constant 0 : index
    %c0_7 = arith.constant 0 : index
    %8 = vector.load %arg6[%c0_6, %c0_7] : memref<128x128xf32, #tpu.memory_space<vmem>>, vector<128x128xf32>
    tpu.vector_store %arg6[%c0_6, %c0_7], %7 {strides = array<i32>} : memref<128x128xf32, #tpu.memory_space<vmem>>, vector<128x128xf32>,
    %c0_i32_8 = arith.constant 0 : i32
    %9 = arith.cmpi eq, %arg1, %c0_i32_8 : i32
    %10 = arith.extui %9 : i1 to i32
    %c0_i32_9 = arith.constant 0 : i32
    %11 = arith.cmpi ne, %10, %c0_i32_9 : i32
    scf.if %11 {
      %c0_10 = arith.constant 0 : index
      %c0_11 = arith.constant 0 : index
      %12 = vector.load %arg6[%c0_10, %c0_11] : memref<128x128xf32, #tpu.memory_space<vmem>>, vector<128x128xf32>
      %c0_12 = arith.constant 0 : index
      %c0_13 = arith.constant 0 : index
      %13 = vector.load %arg4[%c0_12, %c0_13] : memref<1x128xf32, #tpu.memory_space<vmem>>, vector<1x128xf32>
      %14 = vector.broadcast %13 : vector<1x128xf32> to vector<128x128xf32>
      %15 = arith.addf %12, %14 : vector<128x128xf32>
      %16 = arith.truncf %15 : vector<128x128xf32> to vector<128x128xbf16>
      %c0_14 = arith.constant 0 : index
      %c0_15 = arith.constant 0 : index
      %17 = vector.load %arg5[%c0_14, %c0_15] : memref<128x128xbf16, #tpu.memory_space<vmem>>, vector<128x128xbf16>
      tpu.vector_store %arg5[%c0_14, %c0_15], %16 {strides = array<i32>} : memref<128x128xbf16, #tpu.memory_space<vmem>>, vector<128x128xbf16>,
    } else {
    }
    return
  }
  func.func @transform_0(%arg0: i32, %arg1: i32) -> (i32, i32) {
    %c0_i32 = arith.constant 0 : i32
    return %arg0, %arg1 : i32, i32
  }
  func.func @transform_1(%arg0: i32, %arg1: i32) -> (i32, i32) {
    %c0_i32 = arith.constant 0 : i32
    %c0_i32_0 = arith.constant 0 : i32
    return %arg1, %c0_i32 : i32, i32
  }
  func.func @transform_2(%arg0: i32, %arg1: i32) -> (i32, i32) {
    %c0_i32 = arith.constant 0 : i32
    %c0_i32_0 = arith.constant 0 : i32
    %c0_i32_1 = arith.constant 0 : i32
    return %c0_i32, %c0_i32_0 : i32, i32
  }
  func.func @transform_3(%arg0: i32, %arg1: i32) -> (i32, i32) {
    %c0_i32 = arith.constant 0 : i32
    %c0_i32_0 = arith.constant 0 : i32
    return %arg0, %c0_i32 : i32, i32
  }
}

module attributes {stable_mosaic.version = 11 : i64} {
  func.func @_mm_bias_kernel(%arg0: i32, %arg1: i32, %arg2: memref<128x128xbf16, #tpu.memory_space<vmem>>, %arg3: memref<128x128xbf16, #tpu.memory_space<vmem>>, %arg4: memref<1x128xf32, #tpu.memory_space<vmem>>, %arg5: memref<128x128xbf16, #tpu.memory_space<vmem>>, %arg6: memref<128x128xf32, #tpu.memory_space<vmem>>) attributes {dimension_semantics = [#tpu.dimension_semantics<parallel>, #tpu.dimension_semantics<arbitrary>], iteration_bounds = array<i64: 1, 1>, scalar_prefetch = 0 : i64, scratch_operands = 1 : i64, tpu.core_type = #tpu.core_type<tc>, window_params = [{transform_indices = @transform_0, window_bounds = array<i64: 128, 128>}, {transform_indices = @transform_1, window_bounds = array<i64: 128, 128>}, {pipeline_mode = #tpu.pipeline_mode<synchronous>, transform_indices = @transform_2, window_bounds = array<i64: 1, 128>}, {transform_indices = @transform_3, window_bounds = array<i64: 128, 128>}]} {
    %c0_i32 = arith.constant 0 : i32
    %0 = arith.cmpi eq, %arg1, %c0_i32 : i32
    %1 = arith.extui %0 : i1 to i32
    %c0_i32_0 = arith.constant 0 : i32
    %2 = arith.cmpi ne, %1, %c0_i32_0 : i32
    scf.if %2 {
      %cst_10 = arith.constant 0.000000e+00 : f32
      %12 = vector.broadcast %cst_10 : f32 to vector<128x128xf32>
      %c0_11 = arith.constant 0 : index
      %c0_12 = arith.constant 0 : index
      %13 = vector.load %arg6[%c0_11, %c0_12] : memref<128x128xf32, #tpu.memory_space<vmem>>, vector<128x128xf32>
      tpu.vector_store %arg6[%c0_11, %c0_12], %12 {strides = array<i32>} : memref<128x128xf32, #tpu.memory_space<vmem>>, vector<128x128xf32>,
    } else {
    }
    %c0 = arith.constant 0 : index
    %c0_1 = arith.constant 0 : index
    %3 = vector.load %arg6[%c0, %c0_1] : memref<128x128xf32, #tpu.memory_space<vmem>>, vector<128x128xf32>
    %c0_2 = arith.constant 0 : index
    %c0_3 = arith.constant 0 : index
    %4 = vector.load %arg2[%c0_2, %c0_3] : memref<128x128xbf16, #tpu.memory_space<vmem>>, vector<128x128xbf16>
    %c0_4 = arith.constant 0 : index
    %c0_5 = arith.constant 0 : index
    %5 = vector.load %arg3[%c0_4, %c0_5] : memref<128x128xbf16, #tpu.memory_space<vmem>>, vector<128x128xbf16>
    %cst = arith.constant dense<0.000000e+00> : vector<128x128xf32>
    %6 = tpu.matmul %4, %5, %cst {dimension_numbers = #tpu.dot_dimension_numbers<[1], [0], [0], [1], [0, 0, 1, 1], [], []>} : vector<128x128xbf16>, vector<128x128xbf16>, vector<128x128xf32> -> vector<128x128xf32>
    %7 = arith.addf %3, %6 : vector<128x128xf32>
    %c0_6 = arith.constant 0 : index
    %c0_7 = arith.constant 0 : index
    %8 = vector.load %arg6[%c0_6, %c0_7] : memref<128x128xf32, #tpu.memory_space<vmem>>, vector<128x128xf32>
    tpu.vector_store %arg6[%c0_6, %c0_7], %7 {strides = array<i32>} : memref<128x128xf32, #tpu.memory_space<vmem>>, vector<128x128xf32>,
    %c0_i32_8 = arith.constant 0 : i32
    %9 = arith.cmpi eq, %arg1, %c0_i32_8 : i32
    %10 = arith.extui %9 : i1 to i32
    %c0_i32_9 = arith.constant 0 : i32
    %11 = arith.cmpi ne, %10, %c0_i32_9 : i32
    scf.if %11 {
      %c0_10 = arith.constant 0 : index
      %c0_11 = arith.constant 0 : index
      %12 = vector.load %arg6[%c0_10, %c0_11] : memref<128x128xf32, #tpu.memory_space<vmem>>, vector<128x128xf32>
      %c0_12 = arith.constant 0 : index
      %c0_13 = arith.constant 0 : index
      %13 = vector.load %arg4[%c0_12, %c0_13] : memref<1x128xf32, #tpu.memory_space<vmem>>, vector<1x128xf32>
      %14 = vector.broadcast %13 : vector<1x128xf32> to vector<128x128xf32>
      %15 = arith.addf %12, %14 : vector<128x128xf32>
      %cst_14 = arith.constant 0.000000e+00 : f32
      %16 = vector.broadcast %cst_14 : f32 to vector<128x128xf32>
      %17 = arith.maximumf %15, %16 : vector<128x128xf32>
      %18 = arith.truncf %17 : vector<128x128xf32> to vector<128x128xbf16>
      %c0_15 = arith.constant 0 : index
      %c0_16 = arith.constant 0 : index
      %19 = vector.load %arg5[%c0_15, %c0_16] : memref<128x128xbf16, #tpu.memory_space<vmem>>, vector<128x128xbf16>
      tpu.vector_store %arg5[%c0_15, %c0_16], %18 {strides = array<i32>} : memref<128x128xbf16, #tpu.memory_space<vmem>>, vector<128x128xbf16>,
    } else {
    }
    return
  }
  func.func @transform_0(%arg0: i32, %arg1: i32) -> (i32, i32) {
    %c0_i32 = arith.constant 0 : i32
    return %arg0, %arg1 : i32, i32
  }
  func.func @transform_1(%arg0: i32, %arg1: i32) -> (i32, i32) {
    %c0_i32 = arith.constant 0 : i32
    %c0_i32_0 = arith.constant 0 : i32
    return %arg1, %c0_i32 : i32, i32
  }
  func.func @transform_2(%arg0: i32, %arg1: i32) -> (i32, i32) {
    %c0_i32 = arith.constant 0 : i32
    %c0_i32_0 = arith.constant 0 : i32
    %c0_i32_1 = arith.constant 0 : i32
    return %c0_i32, %c0_i32_0 : i32, i32
  }
  func.func @transform_3(%arg0: i32, %arg1: i32) -> (i32, i32) {
    %c0_i32 = arith.constant 0 : i32
    %c0_i32_0 = arith.constant 0 : i32
    return %arg0, %c0_i32 : i32, i32
  }
}

module attributes {stable_mosaic.version = 11 : i64} {
  func.func @_conv3x3_kernel(%arg0: i32, %arg1: memref<1x110x128xbf16, #tpu.memory_space<vmem>>, %arg2: memref<9x128x128xbf16, #tpu.memory_space<vmem>>, %arg3: memref<1x128xf32, #tpu.memory_space<vmem>>, %arg4: memref<1x80x128xbf16, #tpu.memory_space<vmem>>, %arg5: memref<1x80x128xf32, #tpu.memory_space<vmem>>, %arg6: memref<80x128xf32, #tpu.memory_space<vmem>>) attributes {dimension_semantics = [#tpu.dimension_semantics<parallel>], iteration_bounds = array<i64: 2>, scalar_prefetch = 0 : i64, scratch_operands = 1 : i64, tpu.core_type = #tpu.core_type<tc>, window_params = [{transform_indices = @transform_0, window_bounds = array<i64: 1, 110, 128>}, {pipeline_mode = #tpu.pipeline_mode<synchronous>, transform_indices = @transform_1, window_bounds = array<i64: 9, 128, 128>}, {pipeline_mode = #tpu.pipeline_mode<synchronous>, transform_indices = @transform_2, window_bounds = array<i64: 1, 128>}, {transform_indices = @transform_3, window_bounds = array<i64: 1, 80, 128>}, {transform_indices = @transform_4, window_bounds = array<i64: 1, 80, 128>}]} {
    %c0 = arith.constant 0 : index
    %c0_0 = arith.constant 0 : index
    %c0_1 = arith.constant 0 : index
    %0 = vector.load %arg1[%c0, %c0_0, %c0_1] : memref<1x110x128xbf16, #tpu.memory_space<vmem>>, vector<1x80x128xbf16>
    %1 = vector.shape_cast %0 : vector<1x80x128xbf16> to vector<80x128xbf16>
    %c0_2 = arith.constant 0 : index
    %c0_3 = arith.constant 0 : index
    %c0_4 = arith.constant 0 : index
    %2 = vector.load %arg2[%c0_2, %c0_3, %c0_4] : memref<9x128x128xbf16, #tpu.memory_space<vmem>>, vector<1x128x128xbf16>
    %3 = vector.shape_cast %2 : vector<1x128x128xbf16> to vector<128x128xbf16>
    %cst = arith.constant dense<0.000000e+00> : vector<80x128xf32>
    %4 = tpu.matmul %1, %3, %cst {dimension_numbers = #tpu.dot_dimension_numbers<[1], [0], [0], [1], [0, 0, 1, 1], [], []>} : vector<80x128xbf16>, vector<128x128xbf16>, vector<80x128xf32> -> vector<80x128xf32>
    %c0_5 = arith.constant 0 : index
    %c0_6 = arith.constant 0 : index
    %5 = vector.load %arg6[%c0_5, %c0_6] : memref<80x128xf32, #tpu.memory_space<vmem>>, vector<80x128xf32>
    tpu.vector_store %arg6[%c0_5, %c0_6], %4 {strides = array<i32>} : memref<80x128xf32, #tpu.memory_space<vmem>>, vector<80x128xf32>,
    %c0_7 = arith.constant 0 : index
    %c1 = arith.constant 1 : index
    %c0_8 = arith.constant 0 : index
    %6 = vector.load %arg1[%c0_7, %c1, %c0_8] : memref<1x110x128xbf16, #tpu.memory_space<vmem>>, vector<1x80x128xbf16>
    %7 = vector.shape_cast %6 : vector<1x80x128xbf16> to vector<80x128xbf16>
    %c1_9 = arith.constant 1 : index
    %c0_10 = arith.constant 0 : index
    %c0_11 = arith.constant 0 : index
    %8 = vector.load %arg2[%c1_9, %c0_10, %c0_11] : memref<9x128x128xbf16, #tpu.memory_space<vmem>>, vector<1x128x128xbf16>
    %9 = vector.shape_cast %8 : vector<1x128x128xbf16> to vector<128x128xbf16>
    %cst_12 = arith.constant dense<0.000000e+00> : vector<80x128xf32>
    %10 = tpu.matmul %7, %9, %cst_12 {dimension_numbers = #tpu.dot_dimension_numbers<[1], [0], [0], [1], [0, 0, 1, 1], [], []>} : vector<80x128xbf16>, vector<128x128xbf16>, vector<80x128xf32> -> vector<80x128xf32>
    %c0_13 = arith.constant 0 : index
    %c0_14 = arith.constant 0 : index
    %11 = vector.load %arg6[%c0_13, %c0_14] : memref<80x128xf32, #tpu.memory_space<vmem>>, vector<80x128xf32>
    %12 = arith.addf %11, %10 : vector<80x128xf32>
    %c0_15 = arith.constant 0 : index
    %c0_16 = arith.constant 0 : index
    %13 = vector.load %arg6[%c0_15, %c0_16] : memref<80x128xf32, #tpu.memory_space<vmem>>, vector<80x128xf32>
    tpu.vector_store %arg6[%c0_15, %c0_16], %12 {strides = array<i32>} : memref<80x128xf32, #tpu.memory_space<vmem>>, vector<80x128xf32>,
    %c0_17 = arith.constant 0 : index
    %c2 = arith.constant 2 : index
    %c0_18 = arith.constant 0 : index
    %14 = vector.load %arg1[%c0_17, %c2, %c0_18] : memref<1x110x128xbf16, #tpu.memory_space<vmem>>, vector<1x80x128xbf16>
    %15 = vector.shape_cast %14 : vector<1x80x128xbf16> to vector<80x128xbf16>
    %c2_19 = arith.constant 2 : index
    %c0_20 = arith.constant 0 : index
    %c0_21 = arith.constant 0 : index
    %16 = vector.load %arg2[%c2_19, %c0_20, %c0_21] : memref<9x128x128xbf16, #tpu.memory_space<vmem>>, vector<1x128x128xbf16>
    %17 = vector.shape_cast %16 : vector<1x128x128xbf16> to vector<128x128xbf16>
    %cst_22 = arith.constant dense<0.000000e+00> : vector<80x128xf32>
    %18 = tpu.matmul %15, %17, %cst_22 {dimension_numbers = #tpu.dot_dimension_numbers<[1], [0], [0], [1], [0, 0, 1, 1], [], []>} : vector<80x128xbf16>, vector<128x128xbf16>, vector<80x128xf32> -> vector<80x128xf32>
    %c0_23 = arith.constant 0 : index
    %c0_24 = arith.constant 0 : index
    %19 = vector.load %arg6[%c0_23, %c0_24] : memref<80x128xf32, #tpu.memory_space<vmem>>, vector<80x128xf32>
    %20 = arith.addf %19, %18 : vector<80x128xf32>
    %c0_25 = arith.constant 0 : index
    %c0_26 = arith.constant 0 : index
    %21 = vector.load %arg6[%c0_25, %c0_26] : memref<80x128xf32, #tpu.memory_space<vmem>>, vector<80x128xf32>
    tpu.vector_store %arg6[%c0_25, %c0_26], %20 {strides = array<i32>} : memref<80x128xf32, #tpu.memory_space<vmem>>, vector<80x128xf32>,
    %c0_27 = arith.constant 0 : index
    %c10 = arith.constant 10 : index
    %c0_28 = arith.constant 0 : index
    %22 = vector.load %arg1[%c0_27, %c10, %c0_28] : memref<1x110x128xbf16, #tpu.memory_space<vmem>>, vector<1x80x128xbf16>
    %23 = vector.shape_cast %22 : vector<1x80x128xbf16> to vector<80x128xbf16>
    %c3 = arith.constant 3 : index
    %c0_29 = arith.constant 0 : index
    %c0_30 = arith.constant 0 : index
    %24 = vector.load %arg2[%c3, %c0_29, %c0_30] : memref<9x128x128xbf16, #tpu.memory_space<vmem>>, vector<1x128x128xbf16>
    %25 = vector.shape_cast %24 : vector<1x128x128xbf16> to vector<128x128xbf16>
    %cst_31 = arith.constant dense<0.000000e+00> : vector<80x128xf32>
    %26 = tpu.matmul %23, %25, %cst_31 {dimension_numbers = #tpu.dot_dimension_numbers<[1], [0], [0], [1], [0, 0, 1, 1], [], []>} : vector<80x128xbf16>, vector<128x128xbf16>, vector<80x128xf32> -> vector<80x128xf32>
    %c0_32 = arith.constant 0 : index
    %c0_33 = arith.constant 0 : index
    %27 = vector.load %arg6[%c0_32, %c0_33] : memref<80x128xf32, #tpu.memory_space<vmem>>, vector<80x128xf32>
    %28 = arith.addf %27, %26 : vector<80x128xf32>
    %c0_34 = arith.constant 0 : index
    %c0_35 = arith.constant 0 : index
    %29 = vector.load %arg6[%c0_34, %c0_35] : memref<80x128xf32, #tpu.memory_space<vmem>>, vector<80x128xf32>
    tpu.vector_store %arg6[%c0_34, %c0_35], %28 {strides = array<i32>} : memref<80x128xf32, #tpu.memory_space<vmem>>, vector<80x128xf32>,
    %c0_36 = arith.constant 0 : index
    %c11 = arith.constant 11 : index
    %c0_37 = arith.constant 0 : index
    %30 = vector.load %arg1[%c0_36, %c11, %c0_37] : memref<1x110x128xbf16, #tpu.memory_space<vmem>>, vector<1x80x128xbf16>
    %31 = vector.shape_cast %30 : vector<1x80x128xbf16> to vector<80x128xbf16>
    %c4 = arith.constant 4 : index
    %c0_38 = arith.constant 0 : index
    %c0_39 = arith.constant 0 : index
    %32 = vector.load %arg2[%c4, %c0_38, %c0_39] : memref<9x128x128xbf16, #tpu.memory_space<vmem>>, vector<1x128x128xbf16>
    %33 = vector.shape_cast %32 : vector<1x128x128xbf16> to vector<128x128xbf16>
    %cst_40 = arith.constant dense<0.000000e+00> : vector<80x128xf32>
    %34 = tpu.matmul %31, %33, %cst_40 {dimension_numbers = #tpu.dot_dimension_numbers<[1], [0], [0], [1], [0, 0, 1, 1], [], []>} : vector<80x128xbf16>, vector<128x128xbf16>, vector<80x128xf32> -> vector<80x128xf32>
    %c0_41 = arith.constant 0 : index
    %c0_42 = arith.constant 0 : index
    %35 = vector.load %arg6[%c0_41, %c0_42] : memref<80x128xf32, #tpu.memory_space<vmem>>, vector<80x128xf32>
    %36 = arith.addf %35, %34 : vector<80x128xf32>
    %c0_43 = arith.constant 0 : index
    %c0_44 = arith.constant 0 : index
    %37 = vector.load %arg6[%c0_43, %c0_44] : memref<80x128xf32, #tpu.memory_space<vmem>>, vector<80x128xf32>
    tpu.vector_store %arg6[%c0_43, %c0_44], %36 {strides = array<i32>} : memref<80x128xf32, #tpu.memory_space<vmem>>, vector<80x128xf32>,
    %c0_45 = arith.constant 0 : index
    %c12 = arith.constant 12 : index
    %c0_46 = arith.constant 0 : index
    %38 = vector.load %arg1[%c0_45, %c12, %c0_46] : memref<1x110x128xbf16, #tpu.memory_space<vmem>>, vector<1x80x128xbf16>
    %39 = vector.shape_cast %38 : vector<1x80x128xbf16> to vector<80x128xbf16>
    %c5 = arith.constant 5 : index
    %c0_47 = arith.constant 0 : index
    %c0_48 = arith.constant 0 : index
    %40 = vector.load %arg2[%c5, %c0_47, %c0_48] : memref<9x128x128xbf16, #tpu.memory_space<vmem>>, vector<1x128x128xbf16>
    %41 = vector.shape_cast %40 : vector<1x128x128xbf16> to vector<128x128xbf16>
    %cst_49 = arith.constant dense<0.000000e+00> : vector<80x128xf32>
    %42 = tpu.matmul %39, %41, %cst_49 {dimension_numbers = #tpu.dot_dimension_numbers<[1], [0], [0], [1], [0, 0, 1, 1], [], []>} : vector<80x128xbf16>, vector<128x128xbf16>, vector<80x128xf32> -> vector<80x128xf32>
    %c0_50 = arith.constant 0 : index
    %c0_51 = arith.constant 0 : index
    %43 = vector.load %arg6[%c0_50, %c0_51] : memref<80x128xf32, #tpu.memory_space<vmem>>, vector<80x128xf32>
    %44 = arith.addf %43, %42 : vector<80x128xf32>
    %c0_52 = arith.constant 0 : index
    %c0_53 = arith.constant 0 : index
    %45 = vector.load %arg6[%c0_52, %c0_53] : memref<80x128xf32, #tpu.memory_space<vmem>>, vector<80x128xf32>
    tpu.vector_store %arg6[%c0_52, %c0_53], %44 {strides = array<i32>} : memref<80x128xf32, #tpu.memory_space<vmem>>, vector<80x128xf32>,
    %c0_54 = arith.constant 0 : index
    %c20 = arith.constant 20 : index
    %c0_55 = arith.constant 0 : index
    %46 = vector.load %arg1[%c0_54, %c20, %c0_55] : memref<1x110x128xbf16, #tpu.memory_space<vmem>>, vector<1x80x128xbf16>
    %47 = vector.shape_cast %46 : vector<1x80x128xbf16> to vector<80x128xbf16>
    %c6 = arith.constant 6 : index
    %c0_56 = arith.constant 0 : index
    %c0_57 = arith.constant 0 : index
    %48 = vector.load %arg2[%c6, %c0_56, %c0_57] : memref<9x128x128xbf16, #tpu.memory_space<vmem>>, vector<1x128x128xbf16>
    %49 = vector.shape_cast %48 : vector<1x128x128xbf16> to vector<128x128xbf16>
    %cst_58 = arith.constant dense<0.000000e+00> : vector<80x128xf32>
    %50 = tpu.matmul %47, %49, %cst_58 {dimension_numbers = #tpu.dot_dimension_numbers<[1], [0], [0], [1], [0, 0, 1, 1], [], []>} : vector<80x128xbf16>, vector<128x128xbf16>, vector<80x128xf32> -> vector<80x128xf32>
    %c0_59 = arith.constant 0 : index
    %c0_60 = arith.constant 0 : index
    %51 = vector.load %arg6[%c0_59, %c0_60] : memref<80x128xf32, #tpu.memory_space<vmem>>, vector<80x128xf32>
    %52 = arith.addf %51, %50 : vector<80x128xf32>
    %c0_61 = arith.constant 0 : index
    %c0_62 = arith.constant 0 : index
    %53 = vector.load %arg6[%c0_61, %c0_62] : memref<80x128xf32, #tpu.memory_space<vmem>>, vector<80x128xf32>
    tpu.vector_store %arg6[%c0_61, %c0_62], %52 {strides = array<i32>} : memref<80x128xf32, #tpu.memory_space<vmem>>, vector<80x128xf32>,
    %c0_63 = arith.constant 0 : index
    %c21 = arith.constant 21 : index
    %c0_64 = arith.constant 0 : index
    %54 = vector.load %arg1[%c0_63, %c21, %c0_64] : memref<1x110x128xbf16, #tpu.memory_space<vmem>>, vector<1x80x128xbf16>
    %55 = vector.shape_cast %54 : vector<1x80x128xbf16> to vector<80x128xbf16>
    %c7 = arith.constant 7 : index
    %c0_65 = arith.constant 0 : index
    %c0_66 = arith.constant 0 : index
    %56 = vector.load %arg2[%c7, %c0_65, %c0_66] : memref<9x128x128xbf16, #tpu.memory_space<vmem>>, vector<1x128x128xbf16>
    %57 = vector.shape_cast %56 : vector<1x128x128xbf16> to vector<128x128xbf16>
    %cst_67 = arith.constant dense<0.000000e+00> : vector<80x128xf32>
    %58 = tpu.matmul %55, %57, %cst_67 {dimension_numbers = #tpu.dot_dimension_numbers<[1], [0], [0], [1], [0, 0, 1, 1], [], []>} : vector<80x128xbf16>, vector<128x128xbf16>, vector<80x128xf32> -> vector<80x128xf32>
    %c0_68 = arith.constant 0 : index
    %c0_69 = arith.constant 0 : index
    %59 = vector.load %arg6[%c0_68, %c0_69] : memref<80x128xf32, #tpu.memory_space<vmem>>, vector<80x128xf32>
    %60 = arith.addf %59, %58 : vector<80x128xf32>
    %c0_70 = arith.constant 0 : index
    %c0_71 = arith.constant 0 : index
    %61 = vector.load %arg6[%c0_70, %c0_71] : memref<80x128xf32, #tpu.memory_space<vmem>>, vector<80x128xf32>
    tpu.vector_store %arg6[%c0_70, %c0_71], %60 {strides = array<i32>} : memref<80x128xf32, #tpu.memory_space<vmem>>, vector<80x128xf32>,
    %c0_72 = arith.constant 0 : index
    %c22 = arith.constant 22 : index
    %c0_73 = arith.constant 0 : index
    %62 = vector.load %arg1[%c0_72, %c22, %c0_73] : memref<1x110x128xbf16, #tpu.memory_space<vmem>>, vector<1x80x128xbf16>
    %63 = vector.shape_cast %62 : vector<1x80x128xbf16> to vector<80x128xbf16>
    %c8 = arith.constant 8 : index
    %c0_74 = arith.constant 0 : index
    %c0_75 = arith.constant 0 : index
    %64 = vector.load %arg2[%c8, %c0_74, %c0_75] : memref<9x128x128xbf16, #tpu.memory_space<vmem>>, vector<1x128x128xbf16>
    %65 = vector.shape_cast %64 : vector<1x128x128xbf16> to vector<128x128xbf16>
    %cst_76 = arith.constant dense<0.000000e+00> : vector<80x128xf32>
    %66 = tpu.matmul %63, %65, %cst_76 {dimension_numbers = #tpu.dot_dimension_numbers<[1], [0], [0], [1], [0, 0, 1, 1], [], []>} : vector<80x128xbf16>, vector<128x128xbf16>, vector<80x128xf32> -> vector<80x128xf32>
    %c0_77 = arith.constant 0 : index
    %c0_78 = arith.constant 0 : index
    %67 = vector.load %arg6[%c0_77, %c0_78] : memref<80x128xf32, #tpu.memory_space<vmem>>, vector<80x128xf32>
    %68 = arith.addf %67, %66 : vector<80x128xf32>
    %c0_79 = arith.constant 0 : index
    %c0_80 = arith.constant 0 : index
    %69 = vector.load %arg6[%c0_79, %c0_80] : memref<80x128xf32, #tpu.memory_space<vmem>>, vector<80x128xf32>
    tpu.vector_store %arg6[%c0_79, %c0_80], %68 {strides = array<i32>} : memref<80x128xf32, #tpu.memory_space<vmem>>, vector<80x128xf32>,
    %c0_81 = arith.constant 0 : index
    %c0_82 = arith.constant 0 : index
    %70 = vector.load %arg6[%c0_81, %c0_82] : memref<80x128xf32, #tpu.memory_space<vmem>>, vector<80x128xf32>
    %c0_83 = arith.constant 0 : index
    %c0_84 = arith.constant 0 : index
    %71 = vector.load %arg3[%c0_83, %c0_84] : memref<1x128xf32, #tpu.memory_space<vmem>>, vector<1x128xf32>
    %72 = vector.broadcast %71 : vector<1x128xf32> to vector<80x128xf32>
    %73 = arith.addf %70, %72 : vector<80x128xf32>
    %c0_85 = arith.constant 0 : index
    %c0_86 = arith.constant 0 : index
    %c0_87 = arith.constant 0 : index
    %74 = vector.load %arg4[%c0_85, %c0_86, %c0_87] : memref<1x80x128xbf16, #tpu.memory_space<vmem>>, vector<1x80x128xbf16>
    %75 = vector.shape_cast %74 : vector<1x80x128xbf16> to vector<80x128xbf16>
    %76 = arith.extf %75 : vector<80x128xbf16> to vector<80x128xf32>
    %77 = arith.addf %73, %76 : vector<80x128xf32>
    %cst_88 = arith.constant 0.000000e+00 : f32
    %78 = vector.broadcast %cst_88 : f32 to vector<80x128xf32>
    %79 = arith.maximumf %77, %78 : vector<80x128xf32>
    %c0_89 = arith.constant 0 : index
    %c0_90 = arith.constant 0 : index
    %c0_91 = arith.constant 0 : index
    %80 = vector.load %arg5[%c0_89, %c0_90, %c0_91] : memref<1x80x128xf32, #tpu.memory_space<vmem>>, vector<1x80x128xf32>
    %81 = vector.shape_cast %80 : vector<1x80x128xf32> to vector<80x128xf32>
    %82 = vector.shape_cast %79 : vector<80x128xf32> to vector<1x80x128xf32>
    tpu.vector_store %arg5[%c0_89, %c0_90, %c0_91], %82 {strides = array<i32>} : memref<1x80x128xf32, #tpu.memory_space<vmem>>, vector<1x80x128xf32>,
    return
  }
  func.func @transform_0(%arg0: i32) -> (i32, i32, i32) {
    %c0_i32 = arith.constant 0 : i32
    %c0_i32_0 = arith.constant 0 : i32
    %c0_i32_1 = arith.constant 0 : i32
    return %arg0, %c0_i32, %c0_i32_0 : i32, i32, i32
  }
  func.func @transform_1(%arg0: i32) -> (i32, i32, i32) {
    %c0_i32 = arith.constant 0 : i32
    %c0_i32_0 = arith.constant 0 : i32
    %c0_i32_1 = arith.constant 0 : i32
    %c0_i32_2 = arith.constant 0 : i32
    return %c0_i32, %c0_i32_0, %c0_i32_1 : i32, i32, i32
  }
  func.func @transform_2(%arg0: i32) -> (i32, i32) {
    %c0_i32 = arith.constant 0 : i32
    %c0_i32_0 = arith.constant 0 : i32
    %c0_i32_1 = arith.constant 0 : i32
    return %c0_i32, %c0_i32_0 : i32, i32
  }
  func.func @transform_3(%arg0: i32) -> (i32, i32, i32) {
    %c0_i32 = arith.constant 0 : i32
    %c0_i32_0 = arith.constant 0 : i32
    %c0_i32_1 = arith.constant 0 : i32
    return %arg0, %c0_i32, %c0_i32_0 : i32, i32, i32
  }
  func.func @transform_4(%arg0: i32) -> (i32, i32, i32) {
    %c0_i32 = arith.constant 0 : i32
    %c0_i32_0 = arith.constant 0 : i32
    %c0_i32_1 = arith.constant 0 : i32
    return %arg0, %c0_i32, %c0_i32_0 : i32, i32, i32
  }
}

</mosaic_0001>

<bundles_post_ra>
// kernel: basic_block_forward.4
= control target key start
LH: loop header
LB: loop body
LE: loop exit
PB: predicated region body
PF: predicated region fallthrough
CT: control target
= control target key end

     0   :  { %s705_s1 = inlined_call_operand.vmem [shape: bf16[128,128], index: 1, kind: input, shape index: {}]   ;;  %s706_s0 = inlined_call_operand.vmem [shape: bf16[128,128], index: 0, kind: input, shape index: {}]   ;;  %s707_s2 = inlined_call_operand.vmem [shape: f32[1,128], index: 2, kind: input, shape index: {}]   ;;  %s708_s3 = inlined_call_operand.vmem [shape: bf16[128,128], index: 3, kind: output, shape index: {}]  }
   0x1   :  { %v594_v0 = vld [vmem:[%s705_s1 + $0x38] sm:$0xff]   ;;  %v595_v1 = vld [vmem:[%s705_s1 + $0x30] sm:$0xff]   ;;  %v596_v2 = vld [vmem:[%s705_s1 + $0x28] sm:$0xff]  }
   0x2   :  { %546 = vmatprep.subr.bf16.mxu0 %v594_v0  ;;  %578 = vmatprep.subr.bf16.mxu1 %v594_v0  ;;  %v597_v3 = vld [vmem:[%s705_s1 + $0x20] sm:$0xff]   ;;  %v598_v6 = vld [vmem:[%s705_s1 + $0x18] sm:$0xff]   ;;  %v599_v7 = vld [vmem:[%s705_s1 + $0x10] sm:$0xff]  }
   0x3   :  { %547 = vmatpush3.bf16.msra.mxu0 %v594_v0  ;;  %586 = vmatpush3.bf16.msra.mxu1 %v594_v0  ;;  %v602_v4 = vld [vmem:[%s706_s0] sm:$0xff]   ;;  %v600_v8 = vld [vmem:[%s705_s1 + $0x8] sm:$0xff]   ;;  %v606_v12 = vld [vmem:[%s706_s0 + $0x10] sm:$0xff]  }
   0x4   :  { %548 = vmatprep.subr.bf16.mxu0 %v595_v1  ;;  %579 = vmatprep.subr.bf16.mxu1 %v595_v1  ;;  %v603_v5 = vld [vmem:[%s706_s0 + $0x20] sm:$0xff]   ;;  %v604_v10 = vld [vmem:[%s706_s0 + $0x8] sm:$0xff]   ;;  %v607_v13 = vld [vmem:[%s706_s0 + $0x30] sm:$0xff]  }
   0x5   :  { %562 = vmatprep.mubr.bf16.mxu0 %v602_v4  ;;  %570 = vmatprep.mubr.bf16.mxu1 %v603_v5  ;;  %v601_v9 = vld [vmem:[%s705_s1] sm:$0xff]   ;;  %v605_v11 = vld [vmem:[%s706_s0 + $0x28] sm:$0xff]   ;;  %v608_v14 = vld [vmem:[%s706_s0 + $0x18] sm:$0xff]  }
   0x6   :  { %v609_v15 = vld [vmem:[%s706_s0 + $0x38] sm:$0xff]   ;;  %v450_v18 = vld [vmem:[%s707_s2] ss:$0 sm:$0xff] }
   0x7   :  { %549 = vmatpush3.bf16.msra.mxu0 %v595_v1  ;;  %587 = vmatpush3.bf16.msra.mxu1 %v595_v1 }
   0x8   :  { %550 = vmatprep.subr.bf16.mxu0 %v596_v2  ;;  %580 = vmatprep.subr.bf16.mxu1 %v596_v2 }
   0xb   :  { %551 = vmatpush3.bf16.msra.mxu0 %v596_v2  ;;  %588 = vmatpush3.bf16.msra.mxu1 %v596_v2 }
   0xc   :  { %552 = vmatprep.subr.bf16.mxu0 %v597_v3  ;;  %581 = vmatprep.subr.bf16.mxu1 %v597_v3 }
   0xf   :  { %553 = vmatpush3.bf16.msra.mxu0 %v597_v3  ;;  %589 = vmatpush3.bf16.msra.mxu1 %v597_v3 }
  0x10   :  { %554 = vmatprep.subr.bf16.mxu0 %v598_v6  ;;  %582 = vmatprep.subr.bf16.mxu1 %v598_v6 }
  0x13   :  { %555 = vmatpush3.bf16.msra.mxu0 %v598_v6  ;;  %590 = vmatpush3.bf16.msra.mxu1 %v598_v6 }
  0x14   :  { %556 = vmatprep.subr.bf16.mxu0 %v599_v7  ;;  %583 = vmatprep.subr.bf16.mxu1 %v599_v7 }
  0x17   :  { %557 = vmatpush3.bf16.msra.mxu0 %v599_v7  ;;  %591 = vmatpush3.bf16.msra.mxu1 %v599_v7 }
  0x18   :  { %558 = vmatprep.subr.bf16.mxu0 %v600_v8  ;;  %584 = vmatprep.subr.bf16.mxu1 %v600_v8 }
  0x1b   :  { %559 = vmatpush3.bf16.msra.mxu0 %v600_v8  ;;  %592 = vmatpush3.bf16.msra.mxu1 %v600_v8 }
  0x1c   :  { %560 = vmatprep.subr.bf16.mxu0 %v601_v9  ;;  %585 = vmatprep.subr.bf16.mxu1 %v601_v9 }
  0x1f   :  { %561 = vmatpush3.bf16.msra.mxu0 %v601_v9  ;;  %593 = vmatpush3.bf16.msra.mxu1 %v601_v9 }
  0x22   :  { %563 = vmatmul.mubr.bf16.vlgmr.msra.gmra.mxu0 %v604_v10  ;;  %571 = vmatmul.mubr.bf16.vlgmr.msra.gmra.mxu1 %v605_v11 }
  0x23   :  { %566 = vmatprep.mubr.bf16.mxu0 %v606_v12  ;;  %574 = vmatprep.mubr.bf16.mxu1 %v607_v13 }
  0x2a   :  { %567 = vmatmul.mubr.bf16.gmra.mxu0 %v608_v14  ;;  %575 = vmatmul.mubr.bf16.gmra.mxu1 %v609_v15 }
  0xe2   :  { %v564_v16 = vpop.f32.mrf.mxu0  ;;  %v572_v17 = vpop.f32.mrf.mxu1 }
  0xe3   :  { %v336_v23 = vadd.f32 %v564_v16, %v450_v18  ;;  %v344_v24 = vadd.f32 %v572_v17, %v450_v18 }
  0xe4   :  { %v213_v19 = vpop.f32.mrf.mxu0  ;;  %v245_v20 = vpop.f32.mrf.mxu1 }
  0xe5   :  { %v334_v27 = vadd.f32 %v450_v18, %v213_v19  ;;  %v342_v28 = vadd.f32 %v450_v18, %v245_v20 }
  0xe6   :  { %v565_v21 = vpop.f32.mrf.mxu0  ;;  %v573_v22 = vpop.f32.mrf.mxu1 }
  0xe7   :  { %v337_v25 = vadd.f32 %v565_v21, %v450_v18  ;;  %v345_v26 = vadd.f32 %v573_v22, %v450_v18 }
  0xe8   :  { %v216_v29 = vpop.f32.mrf.mxu0  ;;  %v248_v30 = vpop.f32.mrf.mxu1 }
  0xe9   :  { %v491_v31 = vpack.c.bf16 %v337_v25, %v336_v23  ;;  %v511_v32 = vpack.c.bf16 %v345_v26, %v344_v24  ;;  %v335_v33 = vadd.f32 %v450_v18, %v216_v29  ;;  %v343_v34 = vadd.f32 %v450_v18, %v248_v30 }
  0xea   :  { %v568_v35 = vpop.f32.mrf.mxu0  ;;  %v576_v36 = vpop.f32.mrf.mxu1 }
  0xeb   :  { %523 = vst [vmem:[%s708_s3 + $0x8] sm:$0xff] %v491_v31   ;;  %527 = vst [vmem:[%s708_s3 + $0x28] sm:$0xff] %v511_v32   ;;  %v486_v37 = vpack.c.bf16 %v335_v33, %v334_v27  ;;  %v506_v38 = vpack.c.bf16 %v343_v34, %v342_v28  ;;  %v340_v43 = vadd.f32 %v568_v35, %v450_v18 }
  0xec   :  { %v229_v39 = vpop.f32.mrf.mxu0  ;;  %v261_v40 = vpop.f32.mrf.mxu1  ;;  %v348_v44 = vadd.f32 %v576_v36, %v450_v18 }
  0xed   :  { %487 = vst [vmem:[%s708_s3] sm:$0xff] %v486_v37   ;;  %526 = vst [vmem:[%s708_s3 + $0x20] sm:$0xff] %v506_v38   ;;  %v338_v47 = vadd.f32 %v450_v18, %v229_v39  ;;  %v346_v48 = vadd.f32 %v450_v18, %v261_v40 }
  0xee   :  { %v569_v41 = vpop.f32.mrf.mxu0  ;;  %v577_v42 = vpop.f32.mrf.mxu1 }
  0xef   :  { %v341_v45 = vadd.f32 %v569_v41, %v450_v18  ;;  %v349_v46 = vadd.f32 %v577_v42, %v450_v18 }
  0xf0   :  { %v232_v49 = vpop.f32.mrf.mxu0  ;;  %v264_v50 = vpop.f32.mrf.mxu1 }
  0xf1   :  { %v501_v51 = vpack.c.bf16 %v341_v45, %v340_v43  ;;  %v521_v52 = vpack.c.bf16 %v349_v46, %v348_v44  ;;  %v339_v53 = vadd.f32 %v450_v18, %v232_v49  ;;  %v347_v54 = vadd.f32 %v450_v18, %v264_v50 }
  0xf3   :  { %525 = vst [vmem:[%s708_s3 + $0x18] sm:$0xff] %v501_v51   ;;  %529 = vst [vmem:[%s708_s3 + $0x38] sm:$0xff] %v521_v52   ;;  %v496_v55 = vpack.c.bf16 %v339_v53, %v338_v47  ;;  %v516_v56 = vpack.c.bf16 %v347_v54, %v346_v48 }
  0xf5   :  { %524 = vst [vmem:[%s708_s3 + $0x10] sm:$0xff] %v496_v55   ;;  %528 = vst [vmem:[%s708_s3 + $0x30] sm:$0xff] %v516_v56  }

// kernel: basic_block_forward.3
= control target key start
LH: loop header
LB: loop body
LE: loop exit
PB: predicated region body
PF: predicated region fallthrough
CT: control target
= control target key end

     0   :  { %s721_s1 = inlined_call_operand.vmem [shape: bf16[128,128], index: 1, kind: input, shape index: {}]   ;;  %s722_s0 = inlined_call_operand.vmem [shape: bf16[128,128], index: 0, kind: input, shape index: {}]   ;;  %s723_s2 = inlined_call_operand.vmem [shape: f32[1,128], index: 2, kind: input, shape index: {}]   ;;  %s724_s3 = inlined_call_operand.vmem [shape: bf16[128,128], index: 3, kind: output, shape index: {}]  }
   0x1   :  { %v610_v0 = vld [vmem:[%s721_s1 + $0x38] sm:$0xff]   ;;  %v611_v1 = vld [vmem:[%s721_s1 + $0x30] sm:$0xff]   ;;  %v612_v2 = vld [vmem:[%s721_s1 + $0x28] sm:$0xff]  }
   0x2   :  { %562 = vmatprep.subr.bf16.mxu0 %v610_v0  ;;  %594 = vmatprep.subr.bf16.mxu1 %v610_v0  ;;  %v613_v3 = vld [vmem:[%s721_s1 + $0x20] sm:$0xff]   ;;  %v614_v6 = vld [vmem:[%s721_s1 + $0x18] sm:$0xff]   ;;  %v615_v7 = vld [vmem:[%s721_s1 + $0x10] sm:$0xff]  }
   0x3   :  { %563 = vmatpush3.bf16.msra.mxu0 %v610_v0  ;;  %602 = vmatpush3.bf16.msra.mxu1 %v610_v0  ;;  %v618_v4 = vld [vmem:[%s722_s0] sm:$0xff]   ;;  %v616_v8 = vld [vmem:[%s721_s1 + $0x8] sm:$0xff]   ;;  %v622_v12 = vld [vmem:[%s722_s0 + $0x10] sm:$0xff]  }
   0x4   :  { %564 = vmatprep.subr.bf16.mxu0 %v611_v1  ;;  %595 = vmatprep.subr.bf16.mxu1 %v611_v1  ;;  %v619_v5 = vld [vmem:[%s722_s0 + $0x20] sm:$0xff]   ;;  %v620_v10 = vld [vmem:[%s722_s0 + $0x8] sm:$0xff]   ;;  %v623_v13 = vld [vmem:[%s722_s0 + $0x30] sm:$0xff]  }
   0x5   :  { %578 = vmatprep.mubr.bf16.mxu0 %v618_v4  ;;  %586 = vmatprep.mubr.bf16.mxu1 %v619_v5  ;;  %v617_v9 = vld [vmem:[%s721_s1] sm:$0xff]   ;;  %v621_v11 = vld [vmem:[%s722_s0 + $0x28] sm:$0xff]   ;;  %v624_v14 = vld [vmem:[%s722_s0 + $0x18] sm:$0xff]  }
   0x6   :  { %v625_v15 = vld [vmem:[%s722_s0 + $0x38] sm:$0xff]   ;;  %v466_v16 = vld [vmem:[%s723_s2] ss:$0 sm:$0xff] }
   0x7   :  { %565 = vmatpush3.bf16.msra.mxu0 %v611_v1  ;;  %603 = vmatpush3.bf16.msra.mxu1 %v611_v1 }
   0x8   :  { %566 = vmatprep.subr.bf16.mxu0 %v612_v2  ;;  %596 = vmatprep.subr.bf16.mxu1 %v612_v2 }
   0xb   :  { %567 = vmatpush3.bf16.msra.mxu0 %v612_v2  ;;  %604 = vmatpush3.bf16.msra.mxu1 %v612_v2 }
   0xc   :  { %568 = vmatprep.subr.bf16.mxu0 %v613_v3  ;;  %597 = vmatprep.subr.bf16.mxu1 %v613_v3 }
   0xf   :  { %569 = vmatpush3.bf16.msra.mxu0 %v613_v3  ;;  %605 = vmatpush3.bf16.msra.mxu1 %v613_v3 }
  0x10   :  { %570 = vmatprep.subr.bf16.mxu0 %v614_v6  ;;  %598 = vmatprep.subr.bf16.mxu1 %v614_v6 }
  0x13   :  { %571 = vmatpush3.bf16.msra.mxu0 %v614_v6  ;;  %606 = vmatpush3.bf16.msra.mxu1 %v614_v6 }
  0x14   :  { %572 = vmatprep.subr.bf16.mxu0 %v615_v7  ;;  %599 = vmatprep.subr.bf16.mxu1 %v615_v7 }
  0x17   :  { %573 = vmatpush3.bf16.msra.mxu0 %v615_v7  ;;  %607 = vmatpush3.bf16.msra.mxu1 %v615_v7 }
  0x18   :  { %574 = vmatprep.subr.bf16.mxu0 %v616_v8  ;;  %600 = vmatprep.subr.bf16.mxu1 %v616_v8 }
  0x1b   :  { %575 = vmatpush3.bf16.msra.mxu0 %v616_v8  ;;  %608 = vmatpush3.bf16.msra.mxu1 %v616_v8 }
  0x1c   :  { %576 = vmatprep.subr.bf16.mxu0 %v617_v9  ;;  %601 = vmatprep.subr.bf16.mxu1 %v617_v9 }
  0x1f   :  { %577 = vmatpush3.bf16.msra.mxu0 %v617_v9  ;;  %609 = vmatpush3.bf16.msra.mxu1 %v617_v9 }
  0x22   :  { %579 = vmatmul.mubr.bf16.vlgmr.msra.gmra.mxu0 %v620_v10  ;;  %587 = vmatmul.mubr.bf16.vlgmr.msra.gmra.mxu1 %v621_v11 }
  0x23   :  { %582 = vmatprep.mubr.bf16.mxu0 %v622_v12  ;;  %590 = vmatprep.mubr.bf16.mxu1 %v623_v13 }
  0x2a   :  { %583 = vmatmul.mubr.bf16.gmra.mxu0 %v624_v14  ;;  %591 = vmatmul.mubr.bf16.gmra.mxu1 %v625_v15 }
  0xe2   :  { %v580_v17 = vpop.f32.mrf.mxu0  ;;  %v588_v18 = vpop.f32.mrf.mxu1 }
  0xe3   :  { %v336_v19 = vadd.f32 %v580_v17, %v466_v16  ;;  %v344_v20 = vadd.f32 %v588_v18, %v466_v16 }
  0xe4   :  { %v213_v21 = vpop.f32.mrf.mxu0  ;;  %v245_v22 = vpop.f32.mrf.mxu1 }
  0xe5   :  { %v334_v23 = vadd.f32 %v466_v16, %v213_v21  ;;  %v342_v24 = vadd.f32 %v466_v16, %v245_v22  ;;  %v352_v29 = vmax.f32 %v336_v19, 0.0  ;;  %v360_v30 = vmax.f32 %v344_v20, 0.0 }
  0xe6   :  { %v581_v25 = vpop.f32.mrf.mxu0  ;;  %v589_v26 = vpop.f32.mrf.mxu1 }
  0xe7   :  { %v337_v27 = vadd.f32 %v581_v25, %v466_v16  ;;  %v345_v28 = vadd.f32 %v589_v26, %v466_v16  ;;  %v350_v37 = vmax.f32 %v334_v23, 0.0  ;;  %v358_v38 = vmax.f32 %v342_v24, 0.0 }
  0xe8   :  { %v216_v31 = vpop.f32.mrf.mxu0  ;;  %v248_v32 = vpop.f32.mrf.mxu1 }
  0xe9   :  { %v353_v33 = vmax.f32 %v337_v27, 0.0  ;;  %v361_v34 = vmax.f32 %v345_v28, 0.0  ;;  %v335_v35 = vadd.f32 %v466_v16, %v216_v31  ;;  %v343_v36 = vadd.f32 %v466_v16, %v248_v32 }
  0xea   :  { %v584_v39 = vpop.f32.mrf.mxu0  ;;  %v592_v40 = vpop.f32.mrf.mxu1 }
  0xeb   :  { %v507_v41 = vpack.c.bf16 %v353_v33, %v352_v29  ;;  %v527_v42 = vpack.c.bf16 %v361_v34, %v360_v30  ;;  %v351_v43 = vmax.f32 %v335_v35, 0.0  ;;  %v359_v44 = vmax.f32 %v343_v36, 0.0 }
  0xec   :  { %v340_v45 = vadd.f32 %v584_v39, %v466_v16  ;;  %v348_v46 = vadd.f32 %v592_v40, %v466_v16  ;;  %v229_v47 = vpop.f32.mrf.mxu0  ;;  %v261_v48 = vpop.f32.mrf.mxu1 }
  0xed   :  { %539 = vst [vmem:[%s724_s3 + $0x8] sm:$0xff] %v507_v41   ;;  %543 = vst [vmem:[%s724_s3 + $0x28] sm:$0xff] %v527_v42   ;;  %v502_v49 = vpack.c.bf16 %v351_v43, %v350_v37  ;;  %v522_v50 = vpack.c.bf16 %v359_v44, %v358_v38  ;;  %v338_v51 = vadd.f32 %v466_v16, %v229_v47 }
  0xee   :  { %v346_v52 = vadd.f32 %v466_v16, %v261_v48  ;;  %v585_v53 = vpop.f32.mrf.mxu0  ;;  %v593_v54 = vpop.f32.mrf.mxu1  ;;  %v356_v57 = vmax.f32 %v340_v45, 0.0  ;;  %v364_v58 = vmax.f32 %v348_v46, 0.0 }
  0xef   :  { %503 = vst [vmem:[%s724_s3] sm:$0xff] %v502_v49   ;;  %542 = vst [vmem:[%s724_s3 + $0x20] sm:$0xff] %v522_v50   ;;  %v341_v55 = vadd.f32 %v585_v53, %v466_v16  ;;  %v349_v56 = vadd.f32 %v593_v54, %v466_v16  ;;  %v354_v1 = vmax.f32 %v338_v51, 0.0 }
  0xf0   :  { %v232_v59 = vpop.f32.mrf.mxu0  ;;  %v264_v60 = vpop.f32.mrf.mxu1  ;;  %v362_v2 = vmax.f32 %v346_v52, 0.0 }
  0xf1   :  { %v357_v61 = vmax.f32 %v341_v55, 0.0  ;;  %v365_v62 = vmax.f32 %v349_v56, 0.0  ;;  %v339_v63 = vadd.f32 %v466_v16, %v232_v59  ;;  %v347_v0 = vadd.f32 %v466_v16, %v264_v60 }
  0xf3   :  { %v517_v3 = vpack.c.bf16 %v357_v61, %v356_v57  ;;  %v537_v4 = vpack.c.bf16 %v365_v62, %v364_v58  ;;  %v355_v5 = vmax.f32 %v339_v63, 0.0  ;;  %v363_v6 = vmax.f32 %v347_v0, 0.0 }
  0xf5   :  { %541 = vst [vmem:[%s724_s3 + $0x18] sm:$0xff] %v517_v3   ;;  %545 = vst [vmem:[%s724_s3 + $0x38] sm:$0xff] %v537_v4   ;;  %v512_v7 = vpack.c.bf16 %v355_v5, %v354_v1  ;;  %v532_v8 = vpack.c.bf16 %v363_v6, %v362_v2 }
  0xf7   :  { %540 = vst [vmem:[%s724_s3 + $0x10] sm:$0xff] %v512_v7   ;;  %544 = vst [vmem:[%s724_s3 + $0x30] sm:$0xff] %v532_v8  }

// kernel: basic_block_forward.5
= control target key start
LH: loop header
LB: loop body
LE: loop exit
PB: predicated region body
PF: predicated region fallthrough
CT: control target
= control target key end

     0   :  { %s3375_s15 = smov 0   ;;  %s3978_s0 = inlined_call_operand.vmem [shape: bf16[2,110,128], index: 0, kind: input, shape index: {}]   ;;  %s3979_s1 = inlined_call_operand.vmem [shape: bf16[9,128,128], index: 1, kind: input, shape index: {}]   ;;  %s3980_s2 = inlined_call_operand.vmem [shape: f32[1,128], index: 2, kind: input, shape index: {}]   ;;  %s3981_s3 = inlined_call_operand.vmem [shape: bf16[2,80,128], index: 3, kind: input, shape index: {}]   ;;  %s3982_s4 = inlined_call_operand.vmem [shape: f32[2,80,128], index: 4, kind: output, shape index: {}]  }
   0x1 LB: > { %s2457_s16 = sadd.s32 4294967295, %s3346_s15   ;;  %p2461_p0 = scmp.ge.s32.totalorder %s3346_s15, 1  ;;  %s3346_s15 = sphi %s3375_s15, %s14_s15  }
   0x2   : > { %p172_p1 = scmp.lt.s32.totalorder %s3346_s15, 3 }
   0x4   : > { %p173_p2 = pnand %p2461_p0, %p172_p1 }
   0x5   : > { %p203_p3 = scmp.lt.s32.totalorder (!%p173_p2), %s2457_s16, 1 }
   0x6   : > { %176 = sbr.rel (%p173_p2) target bundleno = 426 (0x1aa), region = 36 }
   0xb   : > { %v3215_v0 = vld [vmem:[%s3979_s1 + $0x38] sm:$0xff]   ;;  %v3348_v1 = vmov 0.0   ;;  %v3217_v3 = vld [vmem:[%s3979_s1 + $0x30] sm:$0xff]   ;;  %vm3349_vm0 = vmmov 0   ;;  %v3219_v5 = vld [vmem:[%s3979_s1 + $0x28] sm:$0xff]   ;;  %s3984_s16 = smov (!%p203_p3, %s2457_s16), 1 }
   0xc   : > { %2862 = vmatprep.subr.bf16.mxu0 %v3348_v1  ;;  %2898 = vmatprep.subr.bf16.mxu1 %v3348_v1  ;;  %v3216_v2 = vld [vmem:[%s3979_s1 + $0x78] sm:$0xff]   ;;  %v3218_v4 = vld [vmem:[%s3979_s1 + $0x70] sm:$0xff]   ;;  %v3220_v6 = vld [vmem:[%s3979_s1 + $0x68] sm:$0xff]   ;;  %s3202_s7 = smul.u32 56, %s3984_s16  ;;  %vm462_vm1 = vsmask.f32 7424 }
   0xd   : > { %2863 = vmatpush3.bf16.msra.mxu0 %v3215_v0  ;;  %2878 = vmatprep.mubr.msk.bf16.mxu0 %vm3349_vm0, %v3348_v1  ;;  %v3221_v7 = vld [vmem:[%s3979_s1 + $0x20] sm:$0xff]   ;;  %v3223_v9 = vld [vmem:[%s3979_s1 + $0x18] sm:$0xff]   ;;  %v3225_v11 = vld [vmem:[%s3979_s1 + $0x10] sm:$0xff]   ;;  %vm719_vm2 = vcmask 1046528   ;;  %vm1166_vm3 = vsmask.f32 6400 }
   0xe   : > { %2899 = vmatpush3.bf16.msra.mxu1 %v3216_v2  ;;  %2864 = vmatprep.subr.bf16.mxu0 %v3348_v1  ;;  %v3222_v8 = vld [vmem:[%s3979_s1 + $0x60] sm:$0xff]   ;;  %v3224_v10 = vld [vmem:[%s3979_s1 + $0x58] sm:$0xff]   ;;  %s3432_s14 = scalar_lea.vmem %s3978_s0, %s3202_s7  ;;  %v3226_v12 = vld [vmem:[%s3979_s1 + $0x50] sm:$0xff]   ;;  %vm1432_vm4 = vcmask 1045504   ;;  %vm1879_vm5 = vsmask.f32 5376 }
   0xf   : > { %2900 = vmatprep.subr.bf16.mxu1 %v3348_v1  ;;  %2914 = vmatprep.mubr.msk.bf16.mxu1 %vm3349_vm0, %v3348_v1  ;;  %v3232_v13 = vld [vmem:[%s3432_s14] sm:$0xff]   ;;  %v3233_v14 = vld [vmem:[%s3432_s14 + $0x8] sm:$0xff]   ;;  %v3237_v25 = vld [vmem:[%s3432_s14 + $0x10] sm:$0xff]   ;;  %vm2145_vm6 = vcmask 1044480   ;;  %s3204_s5 = smul.u32 80, %s3984_s16 }
  0x10   : > { %v466_v15 = vshll.u32 %v3232_v13, 16  ;;  %v3227_v16 = vld [vmem:[%s3979_s1 + $0x8] sm:$0xff]   ;;  %v464_v18 = vshrl.u32 %v3232_v13, 16  ;;  %v471_v20 = vshll.u32 %v3233_v14, 16  ;;  %v3229_v21 = vld [vmem:[%s3979_s1] sm:$0xff]   ;;  %v3234_v27 = vld [vmem:[%s3979_s1 + $0xb8] sm:$0xff]  }
  0x11   : > { %2865 = vmatpush3.bf16.msra.mxu0 %v3217_v3  ;;  %v3228_v17 = vld [vmem:[%s3979_s1 + $0x48] sm:$0xff]   ;;  %v3230_v22 = vld [vmem:[%s3979_s1 + $0x40] sm:$0xff]   ;;  %v475_v29 = vshrl.u32 %v3233_v14, 16  ;;  %v479_v30 = vshll.u32 %v3237_v25, 16  ;;  %v3238_v31 = vld [vmem:[%s3979_s1 + $0xf8] sm:$0xff]   ;;  %v483_v40 = vshrl.u32 %v3237_v25, 16  ;;  %s3941_s7 = scalar_lea.vmem %s3982_s4, %s3204_s5 }
  0x12   : > { %2901 = vmatpush3.bf16.msra.mxu1 %v3218_v4  ;;  %2866 = vmatprep.subr.bf16.mxu0 %v3348_v1  ;;  %v468_v19 = vrot.slane %v466_v15, 1  ;;  %v473_v24 = vrot.slane %v471_v20, 1  ;;  %v3231_v26 = vld [vmem:[%s3432_s14] sm:$0xff]   ;;  %v3235_v32 = vld [vmem:[%s3979_s1 + $0xb0] sm:$0xff]   ;;  %v3242_v35 = vld [vmem:[%s3432_s14 + $0x18] sm:$0xff]  }
  0x13   : > { %2902 = vmatprep.subr.bf16.mxu1 %v3348_v1  ;;  %v481_v34 = vrot.slane %v479_v30, 1  ;;  %v3240_v36 = vld [vmem:[%s3979_s1 + $0xf0] sm:$0xff]   ;;  %v3236_v37 = vld [vmem:[%s3432_s14 + $0x8] sm:$0xff]   ;;  %v487_v41 = vshll.u32 %v3242_v35, 16  ;;  %v3243_v43 = vld [vmem:[%s3979_s1 + $0xa0] sm:$0xff]   ;;  %v491_v51 = vshrl.u32 %v3242_v35, 16 }
  0x14   : > { %v469_v23 = vor.u32 %v468_v19, %v464_v18  ;;  %v477_v33 = vor.u32 %v475_v29, %v473_v24  ;;  %v3239_v38 = vld [vmem:[%s3979_s1 + $0xa8] sm:$0xff]   ;;  %v3248_v46 = vld [vmem:[%s3432_s14 + $0x20] sm:$0xff]   ;;  %v3241_v48 = vld [vmem:[%s3432_s14 + $0x10] sm:$0xff]  }
  0x15   : > { %2867 = vmatpush3.bf16.msra.mxu0 %v3219_v5  ;;  %v3244_v42 = vld [vmem:[%s3979_s1 + $0xe8] sm:$0xff]   ;;  %v485_v44 = vor.u32 %v483_v40, %v481_v34  ;;  %v489_v45 = vrot.slane %v487_v41, 1  ;;  %v3246_v47 = vld [vmem:[%s3979_s1 + $0xe0] sm:$0xff]   ;;  %v3245_v49 = vld [vmem:[%s3979_s1 + $0x98] sm:$0xff]   ;;  %v495_v52 = vshll.u32 %v3248_v46, 16  ;;  %v499_v60 = vshrl.u32 %v3248_v46, 16 }
  0x16   : > { %2903 = vmatpush3.bf16.msra.mxu1 %v3220_v6  ;;  %2868 = vmatprep.subr.bf16.mxu0 %v3348_v1  ;;  %v474_v28 = vsel %vm462_vm1, %v469_v23, %v473_v24  ;;  %v482_v39 = vsel %vm462_vm1, %v477_v33, %v481_v34  ;;  %v3249_v53 = vld [vmem:[%s3979_s1 + $0xd8] sm:$0xff]   ;;  %v3254_v54 = vld [vmem:[%s3432_s14 + $0x28] ss:$0 sps:$4 sm:$0x11]   ;;  %v3250_v55 = vld [vmem:[%s3979_s1 + $0x90] sm:$0xff]  }
  0x17   : > { %2904 = vmatprep.subr.bf16.mxu1 %v3348_v1  ;;  %v490_v50 = vsel %vm462_vm1, %v485_v44, %v489_v45  ;;  %v493_v56 = vor.u32 %v491_v51, %v489_v45  ;;  %v497_v57 = vrot.slane %v495_v52, 1  ;;  %v3251_v58 = vld [vmem:[%s3979_s1 + $0xd0] sm:$0xff]   ;;  %v3247_v59 = vld [vmem:[%s3432_s14 + $0x18] sm:$0xff]   ;;  %v3252_v62 = vld [vmem:[%s3979_s1 + $0x88] sm:$0xff]   ;;  %v503_v63 = vshll.u32 %v3254_v54, 16 }
  0x18   : > { %v3255_v0 = vld [vmem:[%s3979_s1 + $0xc8] sm:$0xff]   ;;  %v3256_v2 = vld [vmem:[%s3979_s1 + $0x80] sm:$0xff]   ;;  %v3265_v18 = vld [vmem:[%s3432_s14 + $0x14] sm:$0xff]  }
  0x19   : > { %2869 = vmatpush3.bf16.msra.mxu0 %v3221_v7  ;;  %v498_v61 = vsel %vm462_vm1, %v493_v56, %v497_v57  ;;  %v3253_v3 = vld [vmem:[%s3432_s14 + $0x20] sm:$0xff]   ;;  %v501_v4 = vor.u32 %v499_v60, %v497_v57  ;;  %v505_v5 = vrot.slane %v503_v63, 1  ;;  %v3259_v7 = vld [vmem:[%s3432_s14 + $0x8] sm:$0xff]   ;;  %v946_v24 = vrot.slane %v3265_v18, 1  ;;  %v3277_v41 = vld [vmem:[%s3979_s1 + $0x158] sm:$0xff]  }
  0x1a   : > { %2905 = vmatpush3.bf16.msra.mxu1 %v3222_v8  ;;  %2870 = vmatprep.subr.bf16.mxu0 %v3348_v1  ;;  %v3257_v6 = vld [vmem:[%s3979_s1 + $0xc0] sm:$0xff]   ;;  %v721_v13 = vrot.slane %v3259_v7, 1  ;;  %v3267_v25 = vld [vmem:[%s3979_s1 + $0x128] sm:$0xff]   ;;  %v3279_v45 = vld [vmem:[%s3979_s1 + $0x150] sm:$0xff]  }
  0x1b   : > { %2906 = vmatprep.subr.bf16.mxu1 %v3348_v1  ;;  %v3258_v8 = vld [vmem:[%s3432_s14] sm:$0xfe]   ;;  %v3281_v46 = vld [vmem:[%s3432_s14 + $0x28] ss:$0 sps:$4 sm:$0x11]   ;;  %v3292_v63 = vld [vmem:[%s3432_s14 + $0x14] sm:$0xff]  }
  0x1c   : > { %v3270_v29 = vld [vmem:[%s3432_s14 + $0x1c] sm:$0xff]   ;;  %v3276_v40 = vld [vmem:[%s3432_s14 + $0x24] sm:$0xff]  }
  0x1d   : > { %2871 = vmatpush3.bf16.msra.mxu0 %v3223_v9  ;;  %v3261_v9 = vld [vmem:[%s3432_s14 + $0xc] sm:$0xff]   ;;  %v948_v33 = vrot.slane %v3270_v29, 1  ;;  %v3271_v34 = vld [vmem:[%s3979_s1 + $0x120] sm:$0xff]   ;;  %v950_v44 = vrot.slane %v3276_v40, 1 }
  0x1e   : > { %2907 = vmatpush3.bf16.msra.mxu1 %v3224_v10  ;;  %2872 = vmatprep.subr.bf16.mxu0 %v3348_v1  ;;  %v506_v10 = vsel %vm462_vm1, %v501_v4, %v505_v5  ;;  %v944_v15 = vrot.slane %v3261_v9, 1  ;;  %v3274_v35 = vld [vmem:[%s3979_s1 + $0x160] sm:$0xff]   ;;  %v3280_v52 = vld [vmem:[%s3979_s1 + $0x108] sm:$0xff]   ;;  %v1188_v9 = vshll.u32 %v3292_v63, 16 }
  0x1f   : > { %2908 = vmatprep.subr.bf16.mxu1 %v3348_v1  ;;  %v951_v51 = vsel %vm719_vm2, %v948_v33, %v950_v44  ;;  %v3284_v56 = vld [vmem:[%s3979_s1 + $0x100] sm:$0xff]  }
  0x20   : > { %v947_v30 = vsel %vm719_vm2, %v944_v15, %v946_v24 }
  0x21   : > { %2873 = vmatpush3.bf16.msra.mxu0 %v3225_v11  ;;  %v3260_v11 = vld [vmem:[%s3432_s14 + $0x4] sm:$0xfe]  }
  0x22   : > { %2909 = vmatpush3.bf16.msra.mxu1 %v3226_v12  ;;  %2874 = vmatprep.subr.bf16.mxu0 %v3348_v1  ;;  %v720_v12 = vrot.slane %v3258_v8, 1  ;;  %v943_v14 = vrot.slane %v3260_v11, 1  ;;  %v1185_v8 = vshrl.u32 %v3292_v63, 16  ;;  %v3317_v63 = vld [vmem:[%s3432_s14 + $0x10] sm:$0xff]  }
  0x23   : > { %2910 = vmatprep.subr.bf16.mxu1 %v3348_v1 }
  0x24   : > { %v722_v19 = vsel %vm719_vm2, %v720_v12, %v721_v13  ;;  %v945_v20 = vsel %vm719_vm2, %v943_v14, %v944_v15  ;;  %v3290_v14 = vld [vmem:[%s3979_s1 + $0x1b8] sm:$0xff]   ;;  %v1187_v15 = vrot.slane %v1185_v8, 1  ;;  %v1892_v8 = vshll.u32 %v3317_v63, 16 }
  0x25   : > { %2875 = vmatpush3.bf16.msra.mxu0 %v3227_v16  ;;  %v3262_v16 = vld [vmem:[%s3979_s1 + $0x138] sm:$0xff]  }
  0x26   : > { %2911 = vmatpush3.bf16.msra.mxu1 %v3228_v17  ;;  %2876 = vmatprep.subr.bf16.mxu0 %v3348_v1  ;;  %v3264_v17 = vld [vmem:[%s3432_s14 + $0x10] sm:$0xff]  }
  0x27   : > { %2912 = vmatprep.subr.bf16.mxu1 %v3348_v1  ;;  %v723_v23 = vrot.slane %v3264_v17, 1  ;;  %v3297_v17 = vld [vmem:[%s3432_s14 + $0x1c] sm:$0xff]  }
  0x29   : > { %2877 = vmatpush3.bf16.msra.mxu0 %v3229_v21  ;;  %v3266_v21 = vld [vmem:[%s3979_s1 + $0x178] sm:$0xff]  }
  0x2a   : > { %2913 = vmatpush3.bf16.msra.mxu1 %v3230_v22  ;;  %2934 = vmatprep.subr.bf16.mxu0 %v3348_v1  ;;  %v3263_v22 = vld [vmem:[%s3979_s1 + $0x130] sm:$0xff]  }
  0x2b   : > { %2970 = vmatprep.subr.bf16.mxu1 %v3348_v1 }
  0x2c   : > { %2879 = vmatmul.mubr.bf16.vlgmr.msra.gmra.mxu0 %v3231_v26  ;;  %v3268_v26 = vld [vmem:[%s3979_s1 + $0x170] sm:$0xff]  }
  0x2d   : > { %2915 = vmatmul.mubr.bf16.vlgmr.msra.gmra.mxu1 %v474_v28  ;;  %2935 = vmatpush3.bf16.msra.mxu0 %v3234_v27  ;;  %v3269_v27 = vld [vmem:[%s3432_s14 + $0x18] sm:$0xff]   ;;  %v724_v28 = vsel %vm719_vm2, %v721_v13, %v723_v23 }
  0x2e   : > { %2936 = vmatprep.subr.bf16.mxu0 %v3348_v1  ;;  %2882 = vmatprep.mubr.msk.bf16.mxu0 %vm3349_vm0, %v3348_v1 }
  0x2f   : > { %2918 = vmatprep.mubr.msk.bf16.mxu1 %vm3349_vm0, %v3348_v1  ;;  %2971 = vmatpush3.bf16.msra.mxu1 %v3238_v31  ;;  %v3272_v31 = vld [vmem:[%s3979_s1 + $0x168] sm:$0xff]  }
  0x30   : > { %2972 = vmatprep.subr.bf16.mxu1 %v3348_v1 }
  0x31   : > { %2937 = vmatpush3.bf16.msra.mxu0 %v3235_v32  ;;  %v725_v32 = vrot.slane %v3269_v27, 1  ;;  %v3296_v27 = vld [vmem:[%s3979_s1 + $0x1f0] sm:$0xff]  }
  0x32   : > { %2938 = vmatprep.subr.bf16.mxu0 %v3348_v1 }
  0x33   : > { %2973 = vmatpush3.bf16.msra.mxu1 %v3240_v36  ;;  %v726_v36 = vsel %vm719_vm2, %v723_v23, %v725_v32  ;;  %v3291_v23 = vld [vmem:[%s3979_s1 + $0x1b0] sm:$0xff]  }
  0x34   : > { %2883 = vmatmul.mubr.bf16.gmra.mxu0 %v3236_v37  ;;  %2974 = vmatprep.subr.bf16.mxu1 %v3348_v1  ;;  %v3273_v37 = vld [vmem:[%s3979_s1 + $0x118] sm:$0xff]  }
  0x35   : > { %2919 = vmatmul.mubr.bf16.gmra.mxu1 %v482_v39  ;;  %2939 = vmatpush3.bf16.msra.mxu0 %v3239_v38  ;;  %v3275_v38 = vld [vmem:[%s3432_s14 + $0x20] sm:$0xff]   ;;  %v949_v39 = vsel %vm719_vm2, %v946_v24, %v948_v33 }
  0x36   : > { %2886 = vmatprep.mubr.msk.bf16.mxu0 %vm3349_vm0, %v3348_v1  ;;  %2922 = vmatprep.mubr.msk.bf16.mxu1 %vm3349_vm0, %v3348_v1 }
  0x37   : > { %2940 = vmatprep.subr.bf16.mxu0 %v3348_v1  ;;  %2975 = vmatpush3.bf16.msra.mxu1 %v3244_v42  ;;  %v727_v42 = vrot.slane %v3275_v38, 1 }
  0x38   : > { %2976 = vmatprep.subr.bf16.mxu1 %v3348_v1 }
  0x39   : > { %2941 = vmatpush3.bf16.msra.mxu0 %v3243_v43  ;;  %v3278_v43 = vld [vmem:[%s3979_s1 + $0x110] sm:$0xff]  }
  0x3a   : > { %2942 = vmatprep.subr.bf16.mxu0 %v3348_v1 }
  0x3b   : > { %2977 = vmatpush3.bf16.msra.mxu1 %v3246_v47  ;;  %v3287_v47 = vld [vmem:[%s3432_s14 + $0xc] sm:$0xff]  }
  0x3c   : > { %2887 = vmatmul.mubr.bf16.gmra.mxu0 %v3241_v48  ;;  %2978 = vmatprep.subr.bf16.mxu1 %v3348_v1  ;;  %v3282_v48 = vld [vmem:[%s3432_s14 + $0x2c] ss:$0 sps:$4 sm:$0x11]   ;;  %v1176_v54 = vshrl.u32 %v3287_v47, 16  ;;  %v1179_v57 = vshll.u32 %v3287_v47, 16 }
  0x3d   : > { %2923 = vmatmul.mubr.bf16.gmra.mxu1 %v490_v50  ;;  %2943 = vmatpush3.bf16.msra.mxu0 %v3245_v49  ;;  %v728_v49 = vsel %vm719_vm2, %v725_v32, %v727_v42  ;;  %v3286_v50 = vld [vmem:[%s3432_s14 + $0x4] sm:$0xfe]   ;;  %v952_v60 = vrot.slane %v3282_v48, 1 }
  0x3e   : > { %2890 = vmatprep.mubr.msk.bf16.mxu0 %vm3349_vm0, %v3348_v1  ;;  %2926 = vmatprep.mubr.msk.bf16.mxu1 %vm3349_vm0, %v3348_v1  ;;  %v1181_v5 = vrot.slane %v1179_v57, 2  ;;  %v3303_v32 = vld [vmem:[%s3432_s14 + $0x24] sm:$0xff]  }
  0x3f   : > { %2944 = vmatprep.subr.bf16.mxu0 %v3348_v1  ;;  %2979 = vmatpush3.bf16.msra.mxu1 %v3249_v53  ;;  %v3283_v53 = vld [vmem:[%s3979_s1 + $0x148] sm:$0xff]   ;;  %v953_v7 = vsel %vm719_vm2, %v950_v44, %v952_v60  ;;  %v1203_v38 = vshrl.u32 %v3303_v32, 16 }
  0x40   : > { %2980 = vmatprep.subr.bf16.mxu1 %v3348_v1  ;;  %v3304_v48 = vld [vmem:[%s3432_s14 + $0x24] sm:$0xff]  }
  0x41   : > { %2945 = vmatpush3.bf16.msra.mxu0 %v3250_v55  ;;  %v729_v55 = vrot.slane %v3281_v46, 1 }
  0x42   : > { %2946 = vmatprep.subr.bf16.mxu0 %v3348_v1 }
  0x43   : > { %2981 = vmatpush3.bf16.msra.mxu1 %v3251_v58  ;;  %v1168_v58 = vshrl.u32 %v3286_v50, 16 }
  0x44   : > { %2891 = vmatmul.mubr.bf16.gmra.mxu0 %v3247_v59  ;;  %2982 = vmatprep.subr.bf16.mxu1 %v3348_v1  ;;  %v1171_v59 = vshll.u32 %v3286_v50, 16 }
  0x45   : > { %2927 = vmatmul.mubr.bf16.gmra.mxu1 %v498_v61  ;;  %2894 = vmatprep.mubr.msk.bf16.mxu0 %vm3349_vm0, %v3348_v1  ;;  %v3285_v61 = vld [vmem:[%s3979_s1 + $0x140] sm:$0xff]  }
  0x46   : > { %2930 = vmatprep.mubr.msk.bf16.mxu1 %vm3349_vm0, %v3348_v1  ;;  %2947 = vmatpush3.bf16.msra.mxu0 %v3252_v62  ;;  %v1178_v62 = vrot.slane %v1176_v54, 1  ;;  %v1173_v4 = vrot.slane %v1171_v59, 2  ;;  %v1440_v54 = vrot.slane %v3304_v48, 2  ;;  %v3310_v59 = vld [vmem:[%s3432_s14 + $0x2c] ss:$0 sps:$4 sm:$0x33]  }
  0x47   : > { %2983 = vmatpush3.bf16.msra.mxu1 %v3255_v0  ;;  %2948 = vmatprep.subr.bf16.mxu0 %v3348_v1  ;;  %v3288_v0 = vld [vmem:[%s3432_s14 + $0x4] sm:$0xfc]  }
  0x48   : > { %2984 = vmatprep.subr.bf16.mxu1 %v3348_v1  ;;  %v1182_v11 = vor.u32 %v1181_v5, %v1178_v62  ;;  %v1433_v12 = vrot.slane %v3288_v0, 2  ;;  %v3316_v62 = vld [vmem:[%s3432_s14 + $0x8] sm:$0xfc]  }
  0x49   : > { %v3311_v0 = vld [vmem:[%s3979_s1 + $0x1c8] sm:$0xff]   ;;  %v1881_v5 = vshrl.u32 %v3316_v62, 16 }
  0x4a   : > { %2949 = vmatpush3.bf16.msra.mxu0 %v3256_v2  ;;  %v730_v2 = vsel %vm719_vm2, %v727_v42, %v729_v55  ;;  %v3301_v42 = vld [vmem:[%s3979_s1 + $0x198] sm:$0xff]   ;;  %v3307_v55 = vld [vmem:[%s3979_s1 + $0x1d0] sm:$0xff]  }
  0x4b   : > { %2985 = vmatpush3.bf16.msra.mxu1 %v3257_v6  ;;  %3006 = vmatprep.subr.bf16.mxu0 %v3348_v1  ;;  %v3289_v6 = vld [vmem:[%s3432_s14 + $0xc] sm:$0xff]  }
  0x4c   : > { %2895 = vmatmul.mubr.bf16.gmra.mxu0 %v3253_v3  ;;  %3042 = vmatprep.subr.bf16.mxu1 %v3348_v1  ;;  %v1170_v3 = vrot.slane %v1168_v58, 1  ;;  %v1434_v13 = vrot.slane %v3289_v6, 2  ;;  %v1884_v6 = vshll.u32 %v3316_v62, 16  ;;  %v3331_v62 = vld [vmem:[%s3432_s14 + $0x30] ss:$0 sps:$4 sm:$0x33]  }
  0x4d   : > { %2931 = vmatmul.mubr.bf16.gmra.mxu1 %v506_v10  ;;  %2950 = vmatprep.mubr.msk.bf16.mxu0 %vm3349_vm0, %v3348_v1 }
  0x4e   : > { %2986 = vmatprep.mubr.msk.bf16.mxu1 %vm3349_vm0, %v3348_v1  ;;  %v1174_v10 = vor.u32 %v1173_v4, %v1170_v3  ;;  %v1442_v3 = vrot.slane %v3310_v59, 2  ;;  %v3312_v4 = vld [vmem:[%s3979_s1 + $0x180] sm:$0xff]  }
  0x50   : > { %v1183_v18 = vsel %vm1166_vm3, %v1174_v10, %v1182_v11 }
  0x54   : > { %2951 = vmatmul.mubr.bf16.vlgmr.msra.gmra.mxu0 %v722_v19  ;;  %v1435_v19 = vsel %vm1432_vm4, %v1433_v12, %v1434_v13  ;;  %v3314_v12 = vld [vmem:[%s3432_s14 + $0x8] sm:$0xfc]  }
  0x55   : > { %2987 = vmatmul.mubr.bf16.vlgmr.msra.gmra.mxu1 %v945_v20  ;;  %3007 = vmatpush3.bf16.msra.mxu0 %v3262_v16  ;;  %v1190_v16 = vrot.slane %v1188_v9, 2  ;;  %v3293_v20 = vld [vmem:[%s3432_s14 + $0x14] sm:$0xff]   ;;  %v3313_v9 = vld [vmem:[%s3979_s1 + $0x1c0] sm:$0xff]  }
  0x56   : > { %3008 = vmatprep.subr.bf16.mxu0 %v3348_v1  ;;  %2954 = vmatprep.mubr.msk.bf16.mxu0 %vm3349_vm0, %v3348_v1 }
  0x57   : > { %2990 = vmatprep.mubr.msk.bf16.mxu1 %vm3349_vm0, %v3348_v1  ;;  %3043 = vmatpush3.bf16.msra.mxu1 %v3266_v21  ;;  %v3294_v21 = vld [vmem:[%s3979_s1 + $0x1f8] sm:$0xff]   ;;  %v1191_v24 = vor.u32 %v1190_v16, %v1187_v15  ;;  %v1886_v15 = vrot.slane %v1884_v6, 3  ;;  %v3333_v6 = vld [vmem:[%s3979_s1 + $0x200] sm:$0xff]  }
  0x58   : > { %3044 = vmatprep.subr.bf16.mxu1 %v3348_v1 }
  0x59   : > { %3009 = vmatpush3.bf16.msra.mxu0 %v3263_v22  ;;  %v1194_v22 = vshrl.u32 %v3297_v17, 16 }
  0x5a   : > { %3010 = vmatprep.subr.bf16.mxu0 %v3348_v1 }
  0x5b   : > { %3045 = vmatpush3.bf16.msra.mxu1 %v3268_v26  ;;  %v1436_v26 = vrot.slane %v3293_v20, 2  ;;  %v1196_v29 = vrot.slane %v1194_v22, 1 }
  0x5c   : > { %2955 = vmatmul.mubr.bf16.gmra.mxu0 %v724_v28  ;;  %3046 = vmatprep.subr.bf16.mxu1 %v3348_v1  ;;  %v3295_v28 = vld [vmem:[%s3979_s1 + $0x1a8] sm:$0xff]  }
  0x5d   : > { %2991 = vmatmul.mubr.bf16.gmra.mxu1 %v947_v30  ;;  %3011 = vmatpush3.bf16.msra.mxu0 %v3267_v25  ;;  %v1197_v25 = vshll.u32 %v3297_v17, 16  ;;  %v1192_v30 = vsel %vm1166_vm3, %v1182_v11, %v1191_v24  ;;  %v1437_v33 = vsel %vm1432_vm4, %v1434_v13, %v1436_v26  ;;  %v1443_v11 = vsel %vm1432_vm4, %v1440_v54, %v1442_v3  ;;  %v3315_v13 = vld [vmem:[%s3432_s14 + $0x10] sm:$0xff]  }
  0x5e   : > { %2958 = vmatprep.mubr.msk.bf16.mxu0 %vm3349_vm0, %v3348_v1  ;;  %2994 = vmatprep.mubr.msk.bf16.mxu1 %vm3349_vm0, %v3348_v1  ;;  %v1894_v17 = vrot.slane %v1892_v8, 3  ;;  %v1657_v20 = vrot.slane %v3315_v13, 2  ;;  %v3334_v8 = vld [vmem:[%s3432_s14 + $0x8] sm:$0xf8]  }
  0x5f   : > { %3012 = vmatprep.subr.bf16.mxu0 %v3348_v1  ;;  %3047 = vmatpush3.bf16.msra.mxu1 %v3272_v31  ;;  %v1199_v31 = vrot.slane %v1197_v25, 2  ;;  %v2146_v13 = vrot.slane %v3334_v8, 3 }
  0x60   : > { %3048 = vmatprep.subr.bf16.mxu1 %v3348_v1 }
  0x61   : > { %3013 = vmatpush3.bf16.msra.mxu0 %v3271_v34  ;;  %v3298_v34 = vld [vmem:[%s3432_s14 + $0x1c] sm:$0xff]  }
  0x62   : > { %3014 = vmatprep.subr.bf16.mxu0 %v3348_v1  ;;  %v1438_v40 = vrot.slane %v3298_v34, 2 }
  0x63   : > { %3049 = vmatpush3.bf16.msra.mxu1 %v3274_v35  ;;  %v3300_v35 = vld [vmem:[%s3979_s1 + $0x1e8] sm:$0xff]  }
  0x64   : > { %2959 = vmatmul.mubr.bf16.gmra.mxu0 %v726_v36  ;;  %3050 = vmatprep.subr.bf16.mxu1 %v3348_v1  ;;  %v1200_v36 = vor.u32 %v1199_v31, %v1196_v29  ;;  %v1439_v47 = vsel %vm1432_vm4, %v1436_v26, %v1438_v40  ;;  %v1441_v60 = vsel %vm1432_vm4, %v1438_v40, %v1440_v54  ;;  %v3318_v26 = vld [vmem:[%s3979_s1 + $0x238] sm:$0xff]   ;;  %v3324_v31 = vld [vmem:[%s3432_s14 + $0x20] sm:$0xff]  }
  0x65   : > { %2995 = vmatmul.mubr.bf16.gmra.mxu1 %v949_v39  ;;  %3015 = vmatpush3.bf16.msra.mxu0 %v3273_v37  ;;  %v3299_v37 = vld [vmem:[%s3979_s1 + $0x1a0] sm:$0xff]   ;;  %v1206_v39 = vshll.u32 %v3303_v32, 16  ;;  %v3319_v32 = vld [vmem:[%s3979_s1 + $0x230] sm:$0xff]  }
  0x66   : > { %2962 = vmatprep.mubr.msk.bf16.mxu0 %vm3349_vm0, %v3348_v1  ;;  %2998 = vmatprep.mubr.msk.bf16.mxu1 %vm3349_vm0, %v3348_v1  ;;  %v1201_v44 = vsel %vm1166_vm3, %v1191_v24, %v1200_v36 }
  0x67   : > { %3016 = vmatprep.subr.bf16.mxu0 %v3348_v1  ;;  %3051 = vmatpush3.bf16.msra.mxu1 %v3277_v41  ;;  %v3302_v41 = vld [vmem:[%s3979_s1 + $0x1e0] sm:$0xff]   ;;  %v1208_v46 = vrot.slane %v1206_v39, 2 }
  0x68   : > { %3052 = vmatprep.subr.bf16.mxu1 %v3348_v1  ;;  %v3323_v39 = vld [vmem:[%s3432_s14 + $0x20] sm:$0xff]  }
  0x69   : > { %3017 = vmatpush3.bf16.msra.mxu0 %v3278_v43  ;;  %v3309_v43 = vld [vmem:[%s3432_s14 + $0x2c] ss:$0 sps:$4 sm:$0x33]  }
  0x6a   : > { %3018 = vmatprep.subr.bf16.mxu0 %v3348_v1 }
  0x6b   : > { %3053 = vmatpush3.bf16.msra.mxu1 %v3279_v45  ;;  %v1205_v45 = vrot.slane %v1203_v38, 1  ;;  %v3322_v38 = vld [vmem:[%s3979_s1 + $0x228] sm:$0xff]  }
  0x6c   : > { %2963 = vmatmul.mubr.bf16.gmra.mxu0 %v728_v49  ;;  %3054 = vmatprep.subr.bf16.mxu1 %v3348_v1  ;;  %v3305_v49 = vld [vmem:[%s3979_s1 + $0x1d8] sm:$0xff]  }
  0x6d   : > { %2999 = vmatmul.mubr.bf16.gmra.mxu1 %v951_v51  ;;  %2966 = vmatprep.mubr.msk.bf16.mxu0 %vm3349_vm0, %v3348_v1  ;;  %v1209_v50 = vor.u32 %v1208_v46, %v1205_v45  ;;  %v3306_v51 = vld [vmem:[%s3979_s1 + $0x190] sm:$0xff]   ;;  %v3325_v45 = vld [vmem:[%s3979_s1 + $0x220] sm:$0xff]  }
  0x6e   : > { %3002 = vmatprep.mubr.msk.bf16.mxu1 %vm3349_vm0, %v3348_v1  ;;  %3019 = vmatpush3.bf16.msra.mxu0 %v3280_v52  ;;  %v1212_v52 = vshrl.u32 %v3309_v43, 16 }
  0x6f   : > { %3055 = vmatpush3.bf16.msra.mxu1 %v3283_v53  ;;  %3020 = vmatprep.subr.bf16.mxu0 %v3348_v1  ;;  %v1215_v53 = vshll.u32 %v3309_v43, 16  ;;  %v3328_v43 = vld [vmem:[%s3432_s14 + $0x28] sm:$0xff]  }
  0x70   : > { %3056 = vmatprep.subr.bf16.mxu1 %v3348_v1  ;;  %v1214_v57 = vrot.slane %v1212_v52, 1  ;;  %v1919_v48 = vshll.u32 %v3328_v43, 16 }
  0x71   : > { %v1217_v58 = vrot.slane %v1215_v53, 2 }
  0x72   : > { %3021 = vmatpush3.bf16.msra.mxu0 %v3284_v56  ;;  %v1210_v56 = vsel %vm1166_vm3, %v1200_v36, %v1209_v50  ;;  %v1910_v36 = vshll.u32 %v3324_v31, 16  ;;  %v1921_v54 = vrot.slane %v1919_v48, 3 }
  0x73   : > { %3057 = vmatpush3.bf16.msra.mxu1 %v3285_v61  ;;  %3078 = vmatprep.subr.bf16.mxu0 %v3348_v1  ;;  %v3308_v61 = vld [vmem:[%s3979_s1 + $0x188] sm:$0xff]  }
  0x74   : > { %2967 = vmatmul.mubr.bf16.gmra.mxu0 %v730_v2  ;;  %3114 = vmatprep.subr.bf16.mxu1 %v3348_v1  ;;  %v1218_v2 = vor.u32 %v1217_v58, %v1214_v57  ;;  %v3329_v57 = vld [vmem:[%s3979_s1 + $0x210] sm:$0xff]  }
  0x75   : > { %3003 = vmatmul.mubr.bf16.gmra.mxu1 %v953_v7  ;;  %3022 = vmatprep.mubr.msk.bf16.mxu0 %vm3349_vm0, %v3348_v1  ;;  %v1889_v7 = vshrl.u32 %v3317_v63, 16 }
  0x76   : > { %3058 = vmatprep.mubr.msk.bf16.mxu1 %vm3349_vm0, %v3348_v1  ;;  %v1219_v10 = vsel %vm1166_vm3, %v1209_v50, %v1218_v2  ;;  %v3326_v50 = vld [vmem:[%s3979_s1 + $0x218] sm:$0xff]  }
  0x77   : > { %v1891_v16 = vrot.slane %v1889_v7, 2 }
  0x79   : > { %v1895_v22 = vor.u32 %v1894_v17, %v1891_v16 }
  0x7c   : > { %3023 = vmatmul.mubr.bf16.vlgmr.msra.gmra.mxu0 %v1183_v18  ;;  %v3321_v18 = vld [vmem:[%s3432_s14 + $0x18] sm:$0xff]  }
  0x7d   : > { %3059 = vmatmul.mubr.bf16.vlgmr.msra.gmra.mxu1 %v1435_v19  ;;  %3079 = vmatpush3.bf16.msra.mxu0 %v3290_v14  ;;  %v1883_v14 = vrot.slane %v1881_v5, 2  ;;  %v1656_v19 = vrot.slane %v3314_v12, 2  ;;  %v1901_v24 = vshll.u32 %v3321_v18, 16  ;;  %v3337_v12 = vld [vmem:[%s3432_s14 + $0x28] sm:$0xff]  }
  0x7e   : > { %3080 = vmatprep.subr.bf16.mxu0 %v3348_v1  ;;  %3026 = vmatprep.mubr.msk.bf16.mxu0 %vm3349_vm0, %v3348_v1  ;;  %v2153_v16 = vrot.slane %v3337_v12, 3 }
  0x7f   : > { %3062 = vmatprep.mubr.msk.bf16.mxu1 %vm3349_vm0, %v3348_v1  ;;  %3115 = vmatpush3.bf16.msra.mxu1 %v3294_v21  ;;  %v1887_v21 = vor.u32 %v1886_v15, %v1883_v14  ;;  %v1658_v25 = vsel %vm1432_vm4, %v1656_v19, %v1657_v20 }
  0x80   : > { %3116 = vmatprep.subr.bf16.mxu1 %v3348_v1 }
  0x81   : > { %3081 = vmatpush3.bf16.msra.mxu0 %v3291_v23  ;;  %v1898_v23 = vshrl.u32 %v3321_v18, 16  ;;  %v3338_v18 = vld [vmem:[%s3432_s14 + $0x18] sm:$0xff]  }
  0x82   : > { %3082 = vmatprep.subr.bf16.mxu0 %v3348_v1 }
  0x83   : > { %3117 = vmatpush3.bf16.msra.mxu1 %v3296_v27  ;;  %v3320_v27 = vld [vmem:[%s3432_s14 + $0x18] sm:$0xff]   ;;  %v1900_v29 = vrot.slane %v1898_v23, 2 }
  0x84   : > { %3027 = vmatmul.mubr.bf16.gmra.mxu0 %v1192_v30  ;;  %3118 = vmatprep.subr.bf16.mxu1 %v3348_v1  ;;  %v1903_v30 = vrot.slane %v1901_v24, 3 }
  0x85   : > { %3063 = vmatmul.mubr.bf16.gmra.mxu1 %v1437_v33  ;;  %3083 = vmatpush3.bf16.msra.mxu0 %v3295_v28  ;;  %v1896_v28 = vsel %vm1879_vm5, %v1887_v21, %v1895_v22  ;;  %v1659_v33 = vrot.slane %v3320_v27, 2  ;;  %v2149_v21 = vrot.slane %v3338_v18, 3 }
  0x86   : > { %3030 = vmatprep.mubr.msk.bf16.mxu0 %vm3349_vm0, %v3348_v1  ;;  %3066 = vmatprep.mubr.msk.bf16.mxu1 %vm3349_vm0, %v3348_v1  ;;  %v1904_v34 = vor.u32 %v1903_v30, %v1900_v29 }
  0x87   : > { %3084 = vmatprep.subr.bf16.mxu0 %v3348_v1  ;;  %3119 = vmatpush3.bf16.msra.mxu1 %v3300_v35  ;;  %v1907_v35 = vshrl.u32 %v3324_v31, 16 }
  0x88   : > { %3120 = vmatprep.subr.bf16.mxu1 %v3348_v1  ;;  %v1905_v40 = vsel %vm1879_vm5, %v1895_v22, %v1904_v34 }
  0x89   : > { %3085 = vmatpush3.bf16.msra.mxu0 %v3299_v37  ;;  %v1660_v37 = vsel %vm1432_vm4, %v1657_v20, %v1659_v33  ;;  %v3339_v20 = vld [vmem:[%s3432_s14 + $0x30] ss:$0 sps:$4 sm:$0x77]  }
  0x8a   : > { %3086 = vmatprep.subr.bf16.mxu0 %v3348_v1  ;;  %v2155_v22 = vrot.slane %v3339_v20, 3 }
  0x8b   : > { %3121 = vmatpush3.bf16.msra.mxu1 %v3302_v41  ;;  %v1909_v41 = vrot.slane %v1907_v35, 2 }
  0x8c   : > { %3031 = vmatmul.mubr.bf16.gmra.mxu0 %v1201_v44  ;;  %3122 = vmatprep.subr.bf16.mxu1 %v3348_v1  ;;  %v1661_v44 = vrot.slane %v3323_v39, 2  ;;  %v2156_v24 = vsel %vm2145_vm6, %v2153_v16, %v2155_v22 }
  0x8d   : > { %3067 = vmatmul.mubr.bf16.gmra.mxu1 %v1439_v47  ;;  %3087 = vmatpush3.bf16.msra.mxu0 %v3301_v42  ;;  %v1912_v42 = vrot.slane %v1910_v36, 3  ;;  %v1916_v47 = vshrl.u32 %v3328_v43, 16 }
  0x8e   : > { %3034 = vmatprep.mubr.msk.bf16.mxu0 %vm3349_vm0, %v3348_v1  ;;  %3070 = vmatprep.mubr.msk.bf16.mxu1 %vm3349_vm0, %v3348_v1 }
  0x8f   : > { %3088 = vmatprep.subr.bf16.mxu0 %v3348_v1  ;;  %3123 = vmatpush3.bf16.msra.mxu1 %v3305_v49  ;;  %v1913_v46 = vor.u32 %v1912_v42, %v1909_v41  ;;  %v1662_v49 = vsel %vm1432_vm4, %v1659_v33, %v1661_v44  ;;  %v1918_v53 = vrot.slane %v1916_v47, 2 }
  0x90   : > { %3124 = vmatprep.subr.bf16.mxu1 %v3348_v1 }
  0x91   : > { %3089 = vmatpush3.bf16.msra.mxu0 %v3306_v51  ;;  %v3327_v51 = vld [vmem:[%s3432_s14 + $0x28] sm:$0xff]   ;;  %v1914_v52 = vsel %vm1879_vm5, %v1904_v34, %v1913_v46  ;;  %v1922_v58 = vor.u32 %v1921_v54, %v1918_v53 }
  0x92   : > { %3090 = vmatprep.subr.bf16.mxu0 %v3348_v1 }
  0x93   : > { %3125 = vmatpush3.bf16.msra.mxu1 %v3307_v55  ;;  %v3332_v55 = vld [vmem:[%s3432_s14 + $0x30] ss:$0 sps:$4 sm:$0x77]   ;;  %v1923_v63 = vsel %vm1879_vm5, %v1913_v46, %v1922_v58 }
  0x94   : > { %3035 = vmatmul.mubr.bf16.gmra.mxu0 %v1210_v56  ;;  %3126 = vmatprep.subr.bf16.mxu1 %v3348_v1  ;;  %v1663_v56 = vrot.slane %v3327_v51, 2  ;;  %v1925_v59 = vshrl.u32 %v3332_v55, 16 }
  0x95   : > { %3071 = vmatmul.mubr.bf16.gmra.mxu1 %v1441_v60  ;;  %3038 = vmatprep.mubr.msk.bf16.mxu0 %vm3349_vm0, %v3348_v1  ;;  %v1928_v60 = vshll.u32 %v3332_v55, 16 }
  0x96   : > { %3074 = vmatprep.mubr.msk.bf16.mxu1 %vm3349_vm0, %v3348_v1  ;;  %3091 = vmatpush3.bf16.msra.mxu0 %v3308_v61  ;;  %v1664_v61 = vsel %vm1432_vm4, %v1661_v44, %v1663_v56  ;;  %v1927_v2 = vrot.slane %v1925_v59, 2 }
  0x97   : > { %3127 = vmatpush3.bf16.msra.mxu1 %v3311_v0  ;;  %3092 = vmatprep.subr.bf16.mxu0 %v3348_v1  ;;  %v3330_v0 = vld [vmem:[%s3979_s1 + $0x208] sm:$0xff]   ;;  %v1930_v3 = vrot.slane %v1928_v60, 3 }
  0x98   : > { %3128 = vmatprep.subr.bf16.mxu1 %v3348_v1 }
  0x99   : > { %v1931_v5 = vor.u32 %v1930_v3, %v1927_v2 }
  0x9a   : > { %3093 = vmatpush3.bf16.msra.mxu0 %v3312_v4  ;;  %v1665_v4 = vrot.slane %v3331_v62, 2 }
  0x9b   : > { %3129 = vmatpush3.bf16.msra.mxu1 %v3313_v9  ;;  %3150 = vmatprep.subr.bf16.mxu0 %v3348_v1  ;;  %v3335_v9 = vld [vmem:[%s3432_s14 + $0x10] sm:$0xff]  }
  0x9c   : > { %3039 = vmatmul.mubr.bf16.gmra.mxu0 %v1219_v10  ;;  %3186 = vmatprep.subr.bf16.mxu1 %v3348_v1  ;;  %v1666_v7 = vsel %vm1432_vm4, %v1663_v56, %v1665_v4  ;;  %v1932_v10 = vsel %vm1879_vm5, %v1922_v58, %v1931_v5  ;;  %v2147_v14 = vrot.slane %v3335_v9, 3 }
  0x9d   : > { %3075 = vmatmul.mubr.bf16.gmra.mxu1 %v1443_v11  ;;  %3094 = vmatprep.mubr.msk.bf16.mxu0 %vm3349_vm0, %v3348_v1  ;;  %v3336_v11 = vld [vmem:[%s3432_s14 + $0x20] sm:$0xff]   ;;  %s3203_s14 = smul.u32 40, %s3984_s16 }
  0x9e   : > { %3130 = vmatprep.mubr.msk.bf16.mxu1 %vm3349_vm0, %v3348_v1  ;;  %v2151_v15 = vrot.slane %v3336_v11, 3  ;;  %v2148_v17 = vsel %vm2145_vm6, %v2146_v13, %v2147_v14  ;;  %v2150_v23 = vsel %vm2145_vm6, %v2147_v14, %v2149_v21 }
  0x9f   : > { %s3917_s28 = scalar_lea.vmem %s3981_s3, %s3203_s14 }
  0xa0   : > { %v2154_v19 = vsel %vm2145_vm6, %v2151_v15, %v2153_v16 }
  0xa4   : > { %3095 = vmatmul.mubr.bf16.vlgmr.msra.gmra.mxu0 %v1658_v25  ;;  %v2152_v25 = vsel %vm2145_vm6, %v2149_v21, %v2151_v15 }
  0xa5   : > { %3131 = vmatmul.mubr.bf16.vlgmr.msra.gmra.mxu1 %v1896_v28  ;;  %3151 = vmatpush3.bf16.msra.mxu0 %v3318_v26 }
  0xa6   : > { %3152 = vmatprep.subr.bf16.mxu0 %v3348_v1  ;;  %3098 = vmatprep.mubr.msk.bf16.mxu0 %vm3349_vm0, %v3348_v1 }
  0xa7   : > { %3134 = vmatprep.mubr.msk.bf16.mxu1 %vm3349_vm0, %v3348_v1  ;;  %3194 = vmatpush3.bf16.msra.mxu1 %v3318_v26 }
  0xa8   : > { %3187 = vmatprep.subr.bf16.mxu1 %v3348_v1 }
  0xa9   : > { %3153 = vmatpush3.bf16.msra.mxu0 %v3319_v32 }
  0xaa   : > { %3154 = vmatprep.subr.bf16.mxu0 %v3348_v1 }
  0xab   : > { %3195 = vmatpush3.bf16.msra.mxu1 %v3319_v32 }
  0xac   : > { %3099 = vmatmul.mubr.bf16.gmra.mxu0 %v1660_v37  ;;  %3188 = vmatprep.subr.bf16.mxu1 %v3348_v1 }
  0xad   : > { %3135 = vmatmul.mubr.bf16.gmra.mxu1 %v1905_v40  ;;  %3155 = vmatpush3.bf16.msra.mxu0 %v3322_v38 }
  0xae   : > { %3102 = vmatprep.mubr.msk.bf16.mxu0 %vm3349_vm0, %v3348_v1  ;;  %3138 = vmatprep.mubr.msk.bf16.mxu1 %vm3349_vm0, %v3348_v1 }
  0xaf   : > { %3156 = vmatprep.subr.bf16.mxu0 %v3348_v1  ;;  %3196 = vmatpush3.bf16.msra.mxu1 %v3322_v38 }
  0xb0   : > { %3189 = vmatprep.subr.bf16.mxu1 %v3348_v1 }
  0xb1   : > { %3157 = vmatpush3.bf16.msra.mxu0 %v3325_v45 }
  0xb2   : > { %3158 = vmatprep.subr.bf16.mxu0 %v3348_v1 }
  0xb3   : > { %3197 = vmatpush3.bf16.msra.mxu1 %v3325_v45 }
  0xb4   : > { %3103 = vmatmul.mubr.bf16.gmra.mxu0 %v1662_v49  ;;  %3190 = vmatprep.subr.bf16.mxu1 %v3348_v1 }
  0xb5   : > { %3139 = vmatmul.mubr.bf16.gmra.mxu1 %v1914_v52  ;;  %3159 = vmatpush3.bf16.msra.mxu0 %v3326_v50 }
  0xb6   : > { %3106 = vmatprep.mubr.msk.bf16.mxu0 %vm3349_vm0, %v3348_v1  ;;  %3142 = vmatprep.mubr.msk.bf16.mxu1 %vm3349_vm0, %v3348_v1 }
  0xb7   : > { %3198 = vmatpush3.bf16.msra.mxu1 %v3326_v50  ;;  %3160 = vmatprep.subr.bf16.mxu0 %v3348_v1 }
  0xb8   : > { %3191 = vmatprep.subr.bf16.mxu1 %v3348_v1 }
  0xb9   : > { %3161 = vmatpush3.bf16.msra.mxu0 %v3329_v57 }
  0xba   : > { %3162 = vmatprep.subr.bf16.mxu0 %v3348_v1 }
  0xbb   : > { %3199 = vmatpush3.bf16.msra.mxu1 %v3329_v57 }
  0xbc   : > { %3107 = vmatmul.mubr.bf16.gmra.mxu0 %v1664_v61  ;;  %3192 = vmatprep.subr.bf16.mxu1 %v3348_v1 }
  0xbd   : > { %3143 = vmatmul.mubr.bf16.gmra.mxu1 %v1923_v63  ;;  %3110 = vmatprep.mubr.msk.bf16.mxu0 %vm3349_vm0, %v3348_v1 }
  0xbe   : > { %3146 = vmatprep.mubr.msk.bf16.mxu1 %vm3349_vm0, %v3348_v1  ;;  %3163 = vmatpush3.bf16.msra.mxu0 %v3330_v0 }
  0xbf   : > { %3200 = vmatpush3.bf16.msra.mxu1 %v3330_v0  ;;  %3164 = vmatprep.subr.bf16.mxu0 %v3348_v1 }
  0xc0   : > { %3193 = vmatprep.subr.bf16.mxu1 %v3348_v1 }
  0xc2   : > { %3165 = vmatpush3.bf16.msra.mxu0 %v3333_v6 }
  0xc3   : > { %3201 = vmatpush3.bf16.msra.mxu1 %v3333_v6 }
  0xc4   : > { %3111 = vmatmul.mubr.bf16.gmra.mxu0 %v1666_v7 }
  0xc5   : > { %3147 = vmatmul.mubr.bf16.gmra.mxu1 %v1932_v10  ;;  %3166 = vmatprep.mubr.msk.bf16.mxu0 %vm3349_vm0, %v3348_v1 }
  0xc6   : > { %3178 = vmatprep.mubr.msk.bf16.mxu1 %vm3349_vm0, %v3348_v1 }
  0xcc   : > { %3167 = vmatmul.mubr.bf16.vlgmr.msra.gmra.mxu0 %v2148_v17 }
  0xcd   : > { %3179 = vmatmul.mubr.bf16.vlgmr.msra.gmra.mxu1 %v2154_v19  ;;  %3170 = vmatprep.mubr.msk.bf16.mxu0 %vm3349_vm0, %v3348_v1 }
  0xce   : > { %3182 = vmatprep.mubr.msk.bf16.mxu1 %vm3349_vm0, %v3348_v1 }
  0xd4   : > { %3171 = vmatmul.mubr.bf16.gmra.mxu0 %v2150_v23 }
  0xd5   : > { %3183 = vmatmul.mubr.bf16.gmra.mxu1 %v2156_v24  ;;  %3174 = vmatprep.mubr.msk.bf16.mxu0 %vm3349_vm0, %v3348_v1 }
  0xdc   : > { %3175 = vmatmul.mubr.bf16.gmra.mxu0 %v2152_v25 }
  0xec   : > { %v357_v26 = vpop.f32.mrf.mxu0 }
  0xed   : > { %v594_v27 = vpop.f32.mrf.mxu1 }
  0xee   : > { %v643_v28 = vadd.f32 %v594_v27, %v357_v26  ;;  %v2880_v29 = vpop.f32.mrf.mxu0 }
  0xef   : > { %v2916_v30 = vpop.f32.mrf.mxu1 }
  0xf0   : > { %v360_v31 = vpop.f32.mrf.mxu0 }
  0xf1   : > { %v597_v32 = vpop.f32.mrf.mxu1 }
  0xf2   : > { %v644_v33 = vadd.f32 %v597_v32, %v360_v31  ;;  %v2881_v34 = vpop.f32.mrf.mxu0 }
  0xf3   : > { %v2917_v35 = vpop.f32.mrf.mxu1 }
  0xf4   : > { %v365_v36 = vpop.f32.mrf.mxu0 }
  0xf5   : > { %v602_v37 = vpop.f32.mrf.mxu1 }
  0xf6   : > { %v645_v38 = vadd.f32 %v602_v37, %v365_v36  ;;  %v2884_v39 = vpop.f32.mrf.mxu0 }
  0xf7   : > { %v2920_v40 = vpop.f32.mrf.mxu1 }
  0xf8   : > { %v368_v41 = vpop.f32.mrf.mxu0 }
  0xf9   : > { %v605_v1 = vpop.f32.mrf.mxu1 }
  0xfa   : > { %v646_v42 = vadd.f32 %v605_v1, %v368_v41  ;;  %v2885_v43 = vpop.f32.mrf.mxu0 }
  0xfb   : > { %v2921_v44 = vpop.f32.mrf.mxu1 }
  0xfc   : > { %v373_v45 = vpop.f32.mrf.mxu0 }
  0xfd   : > { %v610_v46 = vpop.f32.mrf.mxu1 }
  0xfe   : > { %v647_v47 = vadd.f32 %v610_v46, %v373_v45  ;;  %v2888_v48 = vpop.f32.mrf.mxu0 }
  0xff   : > { %v2924_v49 = vpop.f32.mrf.mxu1 }
 0x100   : > { %v376_v50 = vpop.f32.mrf.mxu0 }
 0x101   : > { %v613_v51 = vpop.f32.mrf.mxu1 }
 0x102   : > { %v648_v52 = vadd.f32 %v613_v51, %v376_v50  ;;  %v2889_v53 = vpop.f32.mrf.mxu0 }
 0x103   : > { %v2925_v54 = vpop.f32.mrf.mxu1 }
 0x104   : > { %v381_v55 = vpop.f32.mrf.mxu0 }
 0x105   : > { %v618_v56 = vpop.f32.mrf.mxu1 }
 0x106   : > { %v649_v57 = vadd.f32 %v618_v56, %v381_v55  ;;  %v2892_v58 = vpop.f32.mrf.mxu0 }
 0x107   : > { %v2928_v59 = vpop.f32.mrf.mxu1 }
 0x108   : > { %v384_v60 = vpop.f32.mrf.mxu0 }
 0x109   : > { %v621_v61 = vpop.f32.mrf.mxu1 }
 0x10a   : > { %v650_v62 = vadd.f32 %v621_v61, %v384_v60  ;;  %v2893_v63 = vpop.f32.mrf.mxu0 }
 0x10b   : > { %v2929_v0 = vpop.f32.mrf.mxu1 }
 0x10c   : > { %v389_v2 = vpop.f32.mrf.mxu0 }
 0x10d   : > { %v626_v3 = vpop.f32.mrf.mxu1 }
 0x10e   : > { %v651_v4 = vadd.f32 %v626_v3, %v389_v2  ;;  %v2896_v5 = vpop.f32.mrf.mxu0 }
 0x10f   : > { %v2932_v6 = vpop.f32.mrf.mxu1 }
 0x110   : > { %v392_v7 = vpop.f32.mrf.mxu0 }
 0x111   : > { %v629_v8 = vpop.f32.mrf.mxu1 }
 0x112   : > { %v652_v9 = vadd.f32 %v629_v8, %v392_v7  ;;  %v2897_v10 = vpop.f32.mrf.mxu0 }
 0x113   : > { %v2933_v11 = vpop.f32.mrf.mxu1 }
 0x114   : > { %v818_v12 = vpop.f32.mrf.mxu0 }
 0x115   : > { %v867_v13 = vadd.f32 %v818_v12, %v643_v28  ;;  %v1041_v14 = vpop.f32.mrf.mxu1 }
 0x116   : > { %v2952_v15 = vpop.f32.mrf.mxu0 }
 0x117   : > { %v1090_v16 = vadd.f32 %v1041_v14, %v867_v13  ;;  %v2988_v17 = vpop.f32.mrf.mxu1 }
 0x118   : > { %v821_v18 = vpop.f32.mrf.mxu0 }
 0x119   : > { %v868_v19 = vadd.f32 %v821_v18, %v644_v33  ;;  %v1044_v20 = vpop.f32.mrf.mxu1 }
 0x11a   : > { %v2953_v21 = vpop.f32.mrf.mxu0 }
 0x11b   : > { %v1091_v22 = vadd.f32 %v1044_v20, %v868_v19  ;;  %v2989_v23 = vpop.f32.mrf.mxu1 }
 0x11c   : > { %v826_v24 = vpop.f32.mrf.mxu0 }
 0x11d   : > { %v869_v25 = vadd.f32 %v826_v24, %v645_v38  ;;  %v1049_v26 = vpop.f32.mrf.mxu1 }
 0x11e   : > { %v2956_v27 = vpop.f32.mrf.mxu0 }
 0x11f   : > { %v1092_v29 = vadd.f32 %v1049_v26, %v869_v25  ;;  %v2992_v30 = vpop.f32.mrf.mxu1 }
 0x120   : > { %v829_v31 = vpop.f32.mrf.mxu0 }
 0x121   : > { %v870_v32 = vadd.f32 %v829_v31, %v646_v42  ;;  %v1052_v34 = vpop.f32.mrf.mxu1 }
 0x122   : > { %v2957_v28 = vpop.f32.mrf.mxu0 }
 0x123   : > { %v1093_v35 = vadd.f32 %v1052_v34, %v870_v32  ;;  %v2993_v36 = vpop.f32.mrf.mxu1 }
 0x124   : > { %v834_v37 = vpop.f32.mrf.mxu0 }
 0x125   : > { %v871_v39 = vadd.f32 %v834_v37, %v647_v47  ;;  %v1057_v40 = vpop.f32.mrf.mxu1 }
 0x126   : > { %v2960_v33 = vpop.f32.mrf.mxu0 }
 0x127   : > { %v1094_v41 = vadd.f32 %v1057_v40, %v871_v39  ;;  %v2996_v1 = vpop.f32.mrf.mxu1 }
 0x128   : > { %v837_v43 = vpop.f32.mrf.mxu0 }
 0x129   : > { %v872_v44 = vadd.f32 %v837_v43, %v648_v52  ;;  %v1060_v45 = vpop.f32.mrf.mxu1 }
 0x12a   : > { %v2961_v38 = vpop.f32.mrf.mxu0 }
 0x12b   : > { %v1095_v46 = vadd.f32 %v1060_v45, %v872_v44  ;;  %v2997_v48 = vpop.f32.mrf.mxu1 }
 0x12c   : > { %v842_v49 = vpop.f32.mrf.mxu0 }
 0x12d   : > { %v873_v50 = vadd.f32 %v842_v49, %v649_v57  ;;  %v1065_v51 = vpop.f32.mrf.mxu1 }
 0x12e   : > { %v2964_v42 = vpop.f32.mrf.mxu0 }
 0x12f   : > { %v3870_v53 = vadd.f32 %v1065_v51, %v873_v50  ;;  %v3000_v54 = vpop.f32.mrf.mxu1 }
 0x130   : > { %v845_v55 = vpop.f32.mrf.mxu0 }
 0x131   : > { %v874_v56 = vadd.f32 %v845_v55, %v650_v62  ;;  %v1068_v47 = vpop.f32.mrf.mxu1 }
 0x132   : > { %v2965_v58 = vpop.f32.mrf.mxu0 }
 0x133   : > { %v3872_v59 = vadd.f32 %v1068_v47, %v874_v56  ;;  %v3001_v60 = vpop.f32.mrf.mxu1 }
 0x134   : > { %v850_v61 = vpop.f32.mrf.mxu0 }
 0x135   : > { %v875_v52 = vadd.f32 %v850_v61, %v651_v4  ;;  %v1073_v63 = vpop.f32.mrf.mxu1 }
 0x136   : > { %v2968_v0 = vpop.f32.mrf.mxu0 }
 0x137   : > { %v3874_v2 = vadd.f32 %v1073_v63, %v875_v52  ;;  %v3004_v3 = vpop.f32.mrf.mxu1 }
 0x138   : > { %v853_v57 = vpop.f32.mrf.mxu0 }
 0x139   : > { %v876_v5 = vadd.f32 %v853_v57, %v652_v9  ;;  %v1076_v6 = vpop.f32.mrf.mxu1 }
 0x13a   : > { %v2969_v7 = vpop.f32.mrf.mxu0 }
 0x13b   : > { %v3876_v8 = vadd.f32 %v1076_v6, %v876_v5  ;;  %v3005_v10 = vpop.f32.mrf.mxu1 }
 0x13c   : > { %v1307_v62 = vpop.f32.mrf.mxu0 }
 0x13d   : > { %v1356_v11 = vadd.f32 %v1307_v62, %v1090_v16  ;;  %v1531_v12 = vpop.f32.mrf.mxu1 }
 0x13e   : > { %v3024_v13 = vpop.f32.mrf.mxu0 }
 0x13f   : > { %v3878_v14 = vadd.f32 %v1531_v12, %v1356_v11  ;;  %v3060_v15 = vpop.f32.mrf.mxu1 }
 0x140   : > { %v1310_v4 = vpop.f32.mrf.mxu0 }
 0x141   : > { %v1357_v17 = vadd.f32 %v1310_v4, %v1091_v22  ;;  %v1534_v18 = vpop.f32.mrf.mxu1 }
 0x142   : > { %v3025_v19 = vpop.f32.mrf.mxu0 }
 0x143   : > { %v3880_v20 = vadd.f32 %v1534_v18, %v1357_v17  ;;  %v3061_v21 = vpop.f32.mrf.mxu1 }
 0x144   : > { %v1315_v9 = vpop.f32.mrf.mxu0 }
 0x145   : > { %v1358_v23 = vadd.f32 %v1315_v9, %v1092_v29  ;;  %v1539_v24 = vpop.f32.mrf.mxu1 }
 0x146   : > { %v3028_v25 = vpop.f32.mrf.mxu0 }
 0x147   : > { %v3882_v26 = vadd.f32 %v1539_v24, %v1358_v23  ;;  %v3064_v27 = vpop.f32.mrf.mxu1 }
 0x148   : > { %v1318_v16 = vpop.f32.mrf.mxu0 }
 0x149   : > { %v1359_v30 = vadd.f32 %v1318_v16, %v1093_v35  ;;  %v1542_v31 = vpop.f32.mrf.mxu1 }
 0x14a   : > { %v3029_v32 = vpop.f32.mrf.mxu0 }
 0x14b   : > { %v3884_v34 = vadd.f32 %v1542_v31, %v1359_v30  ;;  %v3065_v28 = vpop.f32.mrf.mxu1 }
 0x14c   : > { %v1323_v22 = vpop.f32.mrf.mxu0 }
 0x14d   : > { %v1360_v36 = vadd.f32 %v1323_v22, %v1094_v41  ;;  %v1547_v37 = vpop.f32.mrf.mxu1 }
 0x14e   : > { %v3032_v39 = vpop.f32.mrf.mxu0 }
 0x14f   : > { %v3886_v40 = vadd.f32 %v1547_v37, %v1360_v36  ;;  %v3068_v33 = vpop.f32.mrf.mxu1 }
 0x150   : > { %v1326_v29 = vpop.f32.mrf.mxu0 }
 0x151   : > { %v1361_v1 = vadd.f32 %v1326_v29, %v1095_v46  ;;  %v1550_v43 = vpop.f32.mrf.mxu1 }
 0x152   : > { %v3033_v44 = vpop.f32.mrf.mxu0 }
 0x153   : > { %v3888_v45 = vadd.f32 %v1550_v43, %v1361_v1  ;;  %v3069_v38 = vpop.f32.mrf.mxu1 }
 0x154   : > { %v1331_v35 = vpop.f32.mrf.mxu0 }
 0x155   : > { %v1555_v48 = vpop.f32.mrf.mxu1  ;;  %v1362_v37 = vadd.f32 %v1331_v35, %v3870_v53 }
 0x156   : > { %v3036_v49 = vpop.f32.mrf.mxu0 }
 0x157   : > { %v3072_v50 = vpop.f32.mrf.mxu1  ;;  %v1586_v43 = vadd.f32 %v1555_v48, %v1362_v37 }
 0x158   : > { %v1334_v51 = vpop.f32.mrf.mxu0 }
 0x159   : > { %v1558_v42 = vpop.f32.mrf.mxu1  ;;  %v1363_v44 = vadd.f32 %v1334_v51, %v3872_v59  ;;  %v2722_v51 = vld [vmem:[%s3917_s28] sm:$0xff]  }
 0x15a   : > { %v3037_v54 = vpop.f32.mrf.mxu0 }
 0x15b   : > { %v3073_v41 = vpop.f32.mrf.mxu1 }
 0x15c   : > { %v1339_v55 = vpop.f32.mrf.mxu0  ;;  %v1587_v41 = vadd.f32 %v1558_v42, %v1363_v44  ;;  %v2723_v42 = vunpack.c.l.bf16 %v2722_v51 }
 0x15d   : > { %v3890_v56 = vpop.f32.mrf.mxu1  ;;  %v1364_v48 = vadd.f32 %v1339_v55, %v3874_v2 }
 0x15e   : > { %v3040_v47 = vpop.f32.mrf.mxu0 }
 0x15f   : > { %v3076_v58 = vpop.f32.mrf.mxu1  ;;  %v1588_v2 = vadd.f32 %v3890_v56, %v1364_v48 }
 0x160   : > { %v3892_v60 = vpop.f32.mrf.mxu0 }
 0x161   : > { %v3894_v46 = vpop.f32.mrf.mxu1  ;;  %v1365_v55 = vadd.f32 %v3892_v60, %v3876_v8  ;;  %v2724_v8 = vunpack.c.h.bf16 %v2722_v51 }
 0x162   : > { %v3041_v61 = vpop.f32.mrf.mxu0 }
 0x163   : > { %v3077_v52 = vpop.f32.mrf.mxu1  ;;  %v2743_v61 = vld [vmem:[%s3917_s28 + $0x18] sm:$0xff]  }
 0x164   : > { %v1754_v63 = vpop.f32.mrf.mxu0 }
 0x165   : > { %v2020_v0 = vpop.f32.mrf.mxu1  ;;  %v1803_v49 = vadd.f32 %v1754_v63, %v3878_v14 }
 0x166   : > { %v3096_v3 = vpop.f32.mrf.mxu0 }
 0x167   : > { %v3132_v57 = vpop.f32.mrf.mxu1  ;;  %v2069_v47 = vadd.f32 %v2020_v0, %v1803_v49  ;;  %v2735_v0 = vunpack.c.l.bf16 %v2743_v61 }
 0x168   : > { %v1757_v5 = vpop.f32.mrf.mxu0  ;;  %v3928_v57 = vld [vmem:[%s3980_s2] ss:$0 sm:$0xff] }
 0x169   : > { %v2023_v6 = vpop.f32.mrf.mxu1  ;;  %v1804_v14 = vadd.f32 %v1757_v5, %v3880_v20 }
 0x16a   : > { %v3097_v7 = vpop.f32.mrf.mxu0 }
 0x16b   : > { %v3133_v10 = vpop.f32.mrf.mxu1 }
 0x16c   : > { %v1762_v62 = vpop.f32.mrf.mxu0 }
 0x16d   : > { %v3896_v11 = vpop.f32.mrf.mxu1 }
 0x16e   : > { %v3100_v12 = vpop.f32.mrf.mxu0 }
 0x16f   : > { %v3136_v13 = vpop.f32.mrf.mxu1  ;;  %v2070_v12 = vadd.f32 %v2023_v6, %v1804_v14 }
 0x170   : > { %v3898_v15 = vpop.f32.mrf.mxu0  ;;  %v1805_v13 = vadd.f32 %v1762_v62, %v3882_v26  ;;  %v2736_v62 = vunpack.c.h.bf16 %v2743_v61 }
 0x171   : > { %v3900_v4 = vpop.f32.mrf.mxu1 }
 0x172   : > { %v3101_v17 = vpop.f32.mrf.mxu0 }
 0x173   : > { %v3137_v18 = vpop.f32.mrf.mxu1 }
 0x174   : > { %v3902_v19 = vpop.f32.mrf.mxu0 }
 0x175   : > { %v3904_v21 = vpop.f32.mrf.mxu1 }
 0x176   : > { %v3104_v9 = vpop.f32.mrf.mxu0 }
 0x177   : > { %v3140_v23 = vpop.f32.mrf.mxu1 }
 0x178   : > { %v3906_v24 = vpop.f32.mrf.mxu0 }
 0x179   : > { %v3908_v25 = vpop.f32.mrf.mxu1 }
 0x17a   : > { %v3105_v27 = vpop.f32.mrf.mxu0 }
 0x17b   : > { %v3141_v16 = vpop.f32.mrf.mxu1 }
 0x17c   : > { %v1778_v30 = vpop.f32.mrf.mxu0 }
 0x17d   : > { %v2044_v31 = vpop.f32.mrf.mxu1  ;;  %v1809_v53 = vadd.f32 %v1778_v30, %v1586_v43 }
 0x17e   : > { %v3108_v32 = vpop.f32.mrf.mxu0 }
 0x17f   : > { %v3144_v28 = vpop.f32.mrf.mxu1  ;;  %v2075_v52 = vadd.f32 %v2044_v31, %v1809_v53  ;;  %v1589_v31 = vadd.f32 %v3894_v46, %v1365_v55  ;;  %v2742_v55 = vld [vmem:[%s3917_s28 + $0x10] sm:$0xff]  }
 0x180   : > { %v1781_v22 = vpop.f32.mrf.mxu0  ;;  %v2741_v28 = vld [vmem:[%s3917_s28 + $0x8] sm:$0xff]  }
 0x181   : > { %v2047_v36 = vpop.f32.mrf.mxu1  ;;  %v1810_v63 = vadd.f32 %v1781_v22, %v1587_v41  ;;  %v2071_v22 = vadd.f32 %v3896_v11, %v1805_v13  ;;  %v2727_v41 = vunpack.c.l.bf16 %v2741_v28 }
 0x182   : > { %v3109_v39 = vpop.f32.mrf.mxu0 }
 0x183   : > { %v3145_v33 = vpop.f32.mrf.mxu1  ;;  %v2076_v9 = vadd.f32 %v2047_v36, %v1810_v63  ;;  %v1806_v36 = vadd.f32 %v3898_v15, %v3884_v34 }
 0x184   : > { %v1786_v29 = vpop.f32.mrf.mxu0  ;;  %v2744_v33 = vld [vmem:[%s3917_s28 + $0x20] sm:$0xff]  }
 0x185   : > { %v2052_v1 = vpop.f32.mrf.mxu1  ;;  %v1811_v23 = vadd.f32 %v1786_v29, %v1588_v2  ;;  %v2739_v15 = vunpack.c.l.bf16 %v2744_v33  ;;  %v2072_v51 = vadd.f32 %v3900_v4, %v1806_v36 }
 0x186   : > { %v3112_v38 = vpop.f32.mrf.mxu0 }
 0x187   : > { %v3148_v50 = vpop.f32.mrf.mxu1  ;;  %v2077_v29 = vadd.f32 %v2052_v1, %v1811_v23  ;;  %v1807_v1 = vadd.f32 %v3902_v19, %v3886_v40  ;;  %v2740_v19 = vunpack.c.h.bf16 %v2744_v33 }
 0x188   : > { %v1789_v35 = vpop.f32.mrf.mxu0 }
 0x189   : > { %v3919_v54 = vpop.f32.mrf.mxu1  ;;  %v1812_v43 = vadd.f32 %v1789_v35, %v1589_v31 }
 0x18a   : > { %v3113_v59 = vpop.f32.mrf.mxu0 }
 0x18b   : > { %v3149_v58 = vpop.f32.mrf.mxu1 }
 0x18c   : > { %v2244_v3 = vpop.f32.mrf.mxu0  ;;  %v2078_v58 = vadd.f32 %v3919_v54, %v1812_v43  ;;  %v1808_v54 = vadd.f32 %v3906_v24, %v3888_v45 }
 0x18d   : > { %v2293_v7 = vadd.f32 %v2244_v3, %v2069_v47  ;;  %v2268_v10 = vpop.f32.mrf.mxu1 }
 0x18e   : > { %v2299_v20 = vadd.f32 %v2268_v10, %v2075_v52  ;;  %v3168_v5 = vpop.f32.mrf.mxu0  ;;  %v2074_v45 = vadd.f32 %v3908_v25, %v1808_v54 }
 0x18f   : > { %v2330_v17 = vadd.f32 %v3928_v57, %v2293_v7  ;;  %v3180_v18 = vpop.f32.mrf.mxu1 }
 0x190   : > { %v2336_v27 = vadd.f32 %v3928_v57, %v2299_v20  ;;  %v2247_v16 = vpop.f32.mrf.mxu0  ;;  %v2073_v20 = vadd.f32 %v3904_v21, %v1807_v1 }
 0x191   : > { %v2360_v56 = vadd.f32 %v2723_v42, %v2330_v17  ;;  %v2294_v30 = vadd.f32 %v2247_v16, %v2070_v12  ;;  %v2271_v60 = vpop.f32.mrf.mxu1  ;;  %v2728_v42 = vunpack.c.h.bf16 %v2741_v28 }
 0x192   : > { %v2366_v26 = vadd.f32 %v2735_v0, %v2336_v27  ;;  %v2300_v6 = vadd.f32 %v2271_v60, %v2076_v9  ;;  %v3169_v32 = vpop.f32.mrf.mxu0  ;;  %v2731_v27 = vunpack.c.l.bf16 %v2742_v55 }
 0x193   : > { %v2370_v37 = vmax.f32 %v2360_v56, 0.0  ;;  %v2331_v46 = vadd.f32 %v3928_v57, %v2294_v30  ;;  %v3181_v39 = vpop.f32.mrf.mxu1 }
 0x194   : > { %v2376_v44 = vmax.f32 %v2366_v26, 0.0  ;;  %v2337_v38 = vadd.f32 %v3928_v57, %v2300_v6  ;;  %v2252_v49 = vpop.f32.mrf.mxu0  ;;  %v2732_v26 = vunpack.c.h.bf16 %v2742_v55 }
 0x195   : > { %2380 = vst [vmem:[%s3941_s7] sm:$0xff] %v2370_v37  ;;  %v2361_v50 = vadd.f32 %v2724_v8, %v2331_v46  ;;  %v2295_v53 = vadd.f32 %v2252_v49, %v2071_v22  ;;  %v2276_v11 = vpop.f32.mrf.mxu1 }
 0x196   : > { %2386 = vst [vmem:[%s3941_s7 + $0x30] sm:$0xff] %v2376_v44  ;;  %v2367_v48 = vadd.f32 %v2736_v62, %v2337_v38  ;;  %v2301_v34 = vadd.f32 %v2276_v11, %v2077_v29  ;;  %v3172_v59 = vpop.f32.mrf.mxu0 }
 0x197   : > { %v2371_v35 = vmax.f32 %v2361_v50, 0.0  ;;  %v2332_v47 = vadd.f32 %v3928_v57, %v2295_v53  ;;  %v3184_v14 = vpop.f32.mrf.mxu1 }
 0x198   : > { %v2377_v61 = vmax.f32 %v2367_v48, 0.0  ;;  %v2338_v52 = vadd.f32 %v3928_v57, %v2301_v34  ;;  %v2255_v63 = vpop.f32.mrf.mxu0 }
 0x199   : > { %2381 = vst [vmem:[%s3941_s7 + $0x8] sm:$0xff] %v2371_v35  ;;  %v2362_v3 = vadd.f32 %v2727_v41, %v2332_v47  ;;  %v2296_v7 = vadd.f32 %v2255_v63, %v2072_v51  ;;  %v2279_v4 = vpop.f32.mrf.mxu1 }
 0x19a   : > { %2387 = vst [vmem:[%s3941_s7 + $0x38] sm:$0xff] %v2377_v61  ;;  %v2368_v10 = vadd.f32 %v2739_v15, %v2338_v52  ;;  %v2302_v40 = vadd.f32 %v2279_v4, %v2078_v58  ;;  %v3173_v2 = vpop.f32.mrf.mxu0 }
 0x19b   : > { %v2372_v0 = vmax.f32 %v2362_v3, 0.0  ;;  %v2333_v5 = vadd.f32 %v3928_v57, %v2296_v7  ;;  %v3185_v12 = vpop.f32.mrf.mxu1 }
 0x19c   : > { %v2378_v13 = vmax.f32 %v2368_v10, 0.0  ;;  %v2339_v17 = vadd.f32 %v3928_v57, %v2302_v40  ;;  %v2260_v18 = vpop.f32.mrf.mxu0 }
 0x19d   : > { %2382 = vst [vmem:[%s3941_s7 + $0x10] sm:$0xff] %v2372_v0  ;;  %v2363_v9 = vadd.f32 %v2728_v42, %v2333_v5  ;;  %v2297_v23 = vadd.f32 %v2260_v18, %v2073_v20 }
 0x19e   : > { %2388 = vst [vmem:[%s3941_s7 + $0x40] sm:$0xff] %v2378_v13  ;;  %v2369_v21 = vadd.f32 %v2740_v19, %v2339_v17  ;;  %v3176_v16 = vpop.f32.mrf.mxu0 }
 0x19f   : > { %v2373_v24 = vmax.f32 %v2363_v9, 0.0  ;;  %v2334_v56 = vadd.f32 %v3928_v57, %v2297_v23 }
 0x1a0   : > { %v2379_v30 = vmax.f32 %v2369_v21, 0.0  ;;  %v2263_v8 = vpop.f32.mrf.mxu0 }
 0x1a1   : > { %2383 = vst [vmem:[%s3941_s7 + $0x18] sm:$0xff] %v2373_v24  ;;  %v2364_v60 = vadd.f32 %v2731_v27, %v2334_v56  ;;  %v2298_v31 = vadd.f32 %v2263_v8, %v2074_v45 }
 0x1a2   : > { %2389 = vst [vmem:[%s3941_s7 + $0x48] sm:$0xff] %v2379_v30  ;;  %v3177_v6 = vpop.f32.mrf.mxu0 }
 0x1a3   : > { %v2374_v62 = vmax.f32 %v2364_v60, 0.0  ;;  %v2335_v32 = vadd.f32 %v3928_v57, %v2298_v31 }
 0x1a5   : > { %2384 = vst [vmem:[%s3941_s7 + $0x20] sm:$0xff] %v2374_v62  ;;  %v2365_v28 = vadd.f32 %v2732_v26, %v2335_v32 }
 0x1a7   : > { %v2375_v22 = vmax.f32 %v2365_v28, 0.0 }
 0x1a9   : > { %2385 = vst [vmem:[%s3941_s7 + $0x28] sm:$0xff] %v2375_v22 }
 0x1aa PF: > { %s14_s15 = sadd.s32 1, %s3346_s15  }
 0x1ab   : > { %p11_p4 = scmp.ge.s32.totalorder %s14_s15, 4  }
 0x1ad   :  { %13 = sbr.rel (!%p11_p4) target bundleno = 1 (0x1), region = 77 }

</bundles_post_ra>
